<compile_context>
chip_gen: v6e
topology: v6e:2x2x1
jax: 0.10.0
libtpu: 0.0.40
codegen_flags: <defaults>
</compile_context>

<pallas_src>
import jax
import jax.numpy as jnp
from jax import lax
from jax.experimental import pallas as pl
from jax.experimental.pallas import tpu as pltpu


def _round_up(x, m):
    return -(-x // m) * m


def _largest_divisor_leq(n, cap):
    cap = max(1, min(n, cap))
    for d in range(cap, 0, -1):
        if n % d == 0:
            return d
    return 1


def _tap_index_map(kh, stride):
    def index_map(n, h):
        return (n, h * stride + kh, 0, 0)
    return index_map


def _const_spec(shape, single_buffer):
    """BlockSpec for an operand whose block never changes across the grid."""
    def index_map(n, h):
        return (0,) * len(shape)
    if single_buffer:
        # Constant block -> one buffer is enough; halves its VMEM cost.
        return pl.BlockSpec(shape, index_map, pipeline_mode=pl.Buffered(1))
    return pl.BlockSpec(shape, index_map)


def _make_conv_kernel(K, stride, Wo, Cin):
    """Fused conv (K*K accumulated MXU matmuls) + per-tile BN partial stats."""

    def kernel(*refs):
        taps = refs[:K]          # K views of the padded input, one per kh
        w_ref = refs[K]          # (K*K, Cin, Cp) bf16
        y_ref = refs[K + 1]      # (1, 1, Wo, Cp) f32
        stats_ref = refs[K + 2]  # (1, 1, 2, Cp) f32

        acc = None
        for kh in range(K):
            x = taps[kh][0, 0]   # (Wp, Cin) bf16 — padded input row ho*s + kh
            for kw in range(K):
                if stride == 1:
                    xt = x[kw:kw + Wo, :]
                else:
                    xt = lax.slice(x, (kw, 0),
                                   (kw + stride * (Wo - 1) + 1, Cin),
                                   (stride, 1))
                p = jnp.dot(xt, w_ref[kh * K + kw],
                            preferred_element_type=jnp.float32)
                acc = p if acc is None else acc + p

        y_ref[0, 0] = acc                                    # (Wo, Cp)
        s1 = jnp.sum(acc, axis=0, keepdims=True)             # (1, Cp)
        s2 = jnp.sum(acc * acc, axis=0, keepdims=True)       # (1, Cp)
        stats_ref[0, 0] = jnp.concatenate([s1, s2], axis=0)  # (2, Cp)

    return kernel


def _bn_lrelu_kernel(y_ref, scale_ref, shift_ref, o_ref):
    yn = y_ref[...] * scale_ref[...] + shift_ref[...]
    o_ref[...] = jnp.where(yn > 0, yn, 0.1 * yn)   # LeakyReLU(0.1)


def conv_bn_lrelu(x_nchw, w, bias, gamma, beta, stride, padding,
                  *, single_buffer_consts=True):
    # Conv bias is mathematically cancelled by training-mode BN mean
    # subtraction -> drop it (saves a VPU add + one operand DMA).
    del bias

    N, Cin, H, W = x_nchw.shape
    K = w.shape[0]
    Cout = w.shape[3]
    Ho = (H + 2 * padding - K) // stride + 1
    Wo = (W + 2 * padding - K) // stride + 1
    Hp, Wp = H + 2 * padding, W + 2 * padding
    Cp = _round_up(Cout, 128)             # lane-dense output channels

    # ---- glue: NCHW -> NHWC, zero-pad, bf16 cast, pad Cout to Cp ----
    x = jnp.transpose(x_nchw, (0, 2, 3, 1)).astype(jnp.bfloat16)
    xp = jnp.pad(x, ((0, 0), (padding, padding), (padding, padding), (0, 0)))
    w2 = jnp.pad(w.reshape(K * K, Cin, Cout).astype(jnp.bfloat16),
                 ((0, 0), (0, 0), (0, Cp - Cout)))
    gp = jnp.pad(gamma.astype(jnp.float32), (0, Cp - Cout))
    bp = jnp.pad(beta.astype(jnp.float32), (0, Cp - Cout))

    # ---- kernel 1: fused conv (no im2col) + BN partial statistics ----
    tap_specs = [
        pl.BlockSpec((1, 1, Wp, Cin), _tap_index_map(kh, stride))
        for kh in range(K)
    ]
    w_spec = _const_spec((K * K, Cin, Cp), single_buffer_consts)

    flops1 = 2 * N * Ho * Wo * K * K * Cin * Cp
    bytes1 = (K * N * Ho * Wp * Cin * 2 + K * K * Cin * Cp * 2
              + N * Ho * Wo * Cp * 4 + N * Ho * 2 * Cp * 4)
    y, stats = pl.pallas_call(
        _make_conv_kernel(K, stride, Wo, Cin),
        out_shape=(jax.ShapeDtypeStruct((N, Ho, Wo, Cp), jnp.float32),
                   jax.ShapeDtypeStruct((N, Ho, 2, Cp), jnp.float32)),
        grid=(N, Ho),
        in_specs=tap_specs + [w_spec],
        out_specs=(pl.BlockSpec((1, 1, Wo, Cp), lambda n, h: (n, h, 0, 0)),
                   pl.BlockSpec((1, 1, 2, Cp), lambda n, h: (n, h, 0, 0))),
        compiler_params=pltpu.CompilerParams(
            dimension_semantics=("parallel", "parallel"),
            vmem_limit_bytes=32 * 1024 * 1024),
        cost_estimate=pl.CostEstimate(flops=flops1, transcendentals=0,
                                      bytes_accessed=bytes1),
    )(*([xp] * K + [w2]))

    # ---- tiny XLA reduction: batch mean / biased var -> scale & shift ----
    tot = jnp.sum(stats, axis=(0, 1))               # (2, Cp)
    cnt = jnp.float32(N * Ho * Wo)
    mean = tot[0] / cnt
    var = tot[1] / cnt - mean * mean                # biased variance
    inv = lax.rsqrt(var + 1e-5)
    scale = (gp * inv).reshape(1, Cp)
    shift = (bp - mean * gp * inv).reshape(1, Cp)

    # ---- kernel 2: streaming normalize + LeakyReLU over row strips ----
    th_cap = max(1, (2 * 1024 * 1024) // (Wo * Cp * 4))
    TH = _largest_divisor_leq(Ho, th_cap)
    flops2 = 4 * N * Ho * Wo * Cp
    bytes2 = 2 * N * Ho * Wo * Cp * 4 + 2 * Cp * 4
    out4 = pl.pallas_call(
        _bn_lrelu_kernel,
        out_shape=jax.ShapeDtypeStruct((N, Ho, Wo, Cp), jnp.float32),
        grid=(N, Ho // TH),
        in_specs=[
            pl.BlockSpec((1, TH, Wo, Cp), lambda n, h: (n, h, 0, 0)),
            _const_spec((1, Cp), single_buffer_consts),
            _const_spec((1, Cp), single_buffer_consts),
        ],
        out_specs=pl.BlockSpec((1, TH, Wo, Cp), lambda n, h: (n, h, 0, 0)),
        compiler_params=pltpu.CompilerParams(
            dimension_semantics=("parallel", "parallel"),
            vmem_limit_bytes=32 * 1024 * 1024),
        cost_estimate=pl.CostEstimate(flops=flops2, transcendentals=0,
                                      bytes_accessed=bytes2),
    )(y, scale, shift)

    out = out4[..., :Cout]                      # drop padded channels
    return jnp.transpose(out, (0, 3, 1, 2))     # back to NCHW, like PyTorch


def reference(x_nchw, w, bias, gamma, beta, stride, padding):
    # Pure-JAX reference mirroring the PyTorch module (training-mode BN),
    # *including* the conv bias (which BN cancels).
    x = jnp.transpose(x_nchw, (0, 2, 3, 1)).astype(jnp.float32)
    y = lax.conv_general_dilated(
        x, w.astype(jnp.float32), (stride, stride),
        [(padding, padding), (padding, padding)],
        dimension_numbers=("NHWC", "HWIO", "NHWC"))
    y = y + bias[None, None, None, :]
    mean = jnp.mean(y, axis=(0, 1, 2), keepdims=True)
    var = jnp.mean((y - mean) ** 2, axis=(0, 1, 2), keepdims=True)
    yn = (y - mean) * lax.rsqrt(var + 1e-5) * gamma + beta
    out = jnp.where(yn > 0, yn, 0.1 * yn)
    return jnp.transpose(out, (0, 3, 1, 2))


if __name__ == "__main__":
    # Conv(c_in=4, c_out=8, k=3, s=1, p=1) on a (2, 4, 16, 16) input.
    N, Cin, H, W = 2, 4, 16, 16
    Cout, K, S, P = 8, 3, 1, 1

    key = jax.random.PRNGKey(0)
    kx, kwt, kb, kg, kbe = jax.random.split(key, 5)
    x = jax.random.normal(kx, (N, Cin, H, W), dtype=jnp.float32)
    w = 0.1 * jax.random.normal(kwt, (K, K, Cin, Cout), dtype=jnp.float32)
    bias = 0.1 * jax.random.normal(kb, (Cout,), dtype=jnp.float32)
    gamma = 1.0 + 0.1 * jax.random.normal(kg, (Cout,), dtype=jnp.float32)
    beta = 0.1 * jax.random.normal(kbe, (Cout,), dtype=jnp.float32)

    try:
        out = conv_bn_lrelu(x, w, bias, gamma, beta, S, P,
                            single_buffer_consts=True)
        out = jax.block_until_ready(out)
    except Exception:
        # Fallback if this JAX build rejects pipeline_mode=pl.Buffered(1).
        out = conv_bn_lrelu(x, w, bias, gamma, beta, S, P,
                            single_buffer_consts=False)
        out = jax.block_until_ready(out)

    ref = reference(x, w, bias, gamma, beta, S, P)
    err = float(jnp.max(jnp.abs(out - ref)))
    assert out.shape == (N, Cout, H, W), out.shape
    assert err < 3e-2, f"max abs err {err}"   # bf16 inputs, f32 accumulation

    print("KERNEL_OK")
</pallas_src>

<mosaic_0001>
module attributes {stable_mosaic.version = 11 : i64} {
  func.func @kernel(%arg0: i32, %arg1: i32, %arg2: memref<1x1x18x4xbf16, #tpu.memory_space<vmem>>, %arg3: memref<1x1x18x4xbf16, #tpu.memory_space<vmem>>, %arg4: memref<1x1x18x4xbf16, #tpu.memory_space<vmem>>, %arg5: memref<9x4x128xbf16, #tpu.memory_space<vmem>>, %arg6: memref<1x1x16x128xf32, #tpu.memory_space<vmem>>, %arg7: memref<1x1x2x128xf32, #tpu.memory_space<vmem>>) attributes {dimension_semantics = [#tpu.dimension_semantics<parallel>, #tpu.dimension_semantics<parallel>], iteration_bounds = array<i64: 2, 16>, scalar_prefetch = 0 : i64, scratch_operands = 0 : i64, tpu.core_type = #tpu.core_type<tc>, window_params = [{transform_indices = @transform_0, window_bounds = array<i64: 1, 1, 18, 4>}, {transform_indices = @transform_1, window_bounds = array<i64: 1, 1, 18, 4>}, {transform_indices = @transform_2, window_bounds = array<i64: 1, 1, 18, 4>}, {pipeline_mode = #tpu.pipeline_mode<synchronous>, transform_indices = @transform_3, window_bounds = array<i64: 9, 4, 128>}, {transform_indices = @transform_4, window_bounds = array<i64: 1, 1, 16, 128>}, {transform_indices = @transform_5, window_bounds = array<i64: 1, 1, 2, 128>}]} {
    %c0 = arith.constant 0 : index
    %c0_0 = arith.constant 0 : index
    %c0_1 = arith.constant 0 : index
    %c0_2 = arith.constant 0 : index
    %0 = vector.load %arg2[%c0, %c0_0, %c0_1, %c0_2] : memref<1x1x18x4xbf16, #tpu.memory_space<vmem>>, vector<1x1x18x4xbf16>
    %1 = vector.shape_cast %0 : vector<1x1x18x4xbf16> to vector<18x4xbf16>
    %2 = vector.extract_strided_slice %1 {offsets = [0, 0], sizes = [16, 4], strides = [1, 1]} : vector<18x4xbf16> to vector<16x4xbf16>
    %c0_3 = arith.constant 0 : index
    %c0_4 = arith.constant 0 : index
    %c0_5 = arith.constant 0 : index
    %3 = vector.load %arg5[%c0_3, %c0_4, %c0_5] : memref<9x4x128xbf16, #tpu.memory_space<vmem>>, vector<1x4x128xbf16>
    %4 = vector.shape_cast %3 : vector<1x4x128xbf16> to vector<4x128xbf16>
    %cst = arith.constant dense<0.000000e+00> : vector<16x128xf32>
    %5 = tpu.matmul %2, %4, %cst {dimension_numbers = #tpu.dot_dimension_numbers<[1], [0], [0], [1], [0, 0, 1, 1], [], []>} : vector<16x4xbf16>, vector<4x128xbf16>, vector<16x128xf32> -> vector<16x128xf32>
    %6 = vector.extract_strided_slice %1 {offsets = [1, 0], sizes = [16, 4], strides = [1, 1]} : vector<18x4xbf16> to vector<16x4xbf16>
    %c1 = arith.constant 1 : index
    %c0_6 = arith.constant 0 : index
    %c0_7 = arith.constant 0 : index
    %7 = vector.load %arg5[%c1, %c0_6, %c0_7] : memref<9x4x128xbf16, #tpu.memory_space<vmem>>, vector<1x4x128xbf16>
    %8 = vector.shape_cast %7 : vector<1x4x128xbf16> to vector<4x128xbf16>
    %cst_8 = arith.constant dense<0.000000e+00> : vector<16x128xf32>
    %9 = tpu.matmul %6, %8, %cst_8 {dimension_numbers = #tpu.dot_dimension_numbers<[1], [0], [0], [1], [0, 0, 1, 1], [], []>} : vector<16x4xbf16>, vector<4x128xbf16>, vector<16x128xf32> -> vector<16x128xf32>
    %10 = arith.addf %5, %9 : vector<16x128xf32>
    %11 = vector.extract_strided_slice %1 {offsets = [2, 0], sizes = [16, 4], strides = [1, 1]} : vector<18x4xbf16> to vector<16x4xbf16>
    %c2 = arith.constant 2 : index
    %c0_9 = arith.constant 0 : index
    %c0_10 = arith.constant 0 : index
    %12 = vector.load %arg5[%c2, %c0_9, %c0_10] : memref<9x4x128xbf16, #tpu.memory_space<vmem>>, vector<1x4x128xbf16>
    %13 = vector.shape_cast %12 : vector<1x4x128xbf16> to vector<4x128xbf16>
    %cst_11 = arith.constant dense<0.000000e+00> : vector<16x128xf32>
    %14 = tpu.matmul %11, %13, %cst_11 {dimension_numbers = #tpu.dot_dimension_numbers<[1], [0], [0], [1], [0, 0, 1, 1], [], []>} : vector<16x4xbf16>, vector<4x128xbf16>, vector<16x128xf32> -> vector<16x128xf32>
    %15 = arith.addf %10, %14 : vector<16x128xf32>
    %c0_12 = arith.constant 0 : index
    %c0_13 = arith.constant 0 : index
    %c0_14 = arith.constant 0 : index
    %c0_15 = arith.constant 0 : index
    %16 = vector.load %arg3[%c0_12, %c0_13, %c0_14, %c0_15] : memref<1x1x18x4xbf16, #tpu.memory_space<vmem>>, vector<1x1x18x4xbf16>
    %17 = vector.shape_cast %16 : vector<1x1x18x4xbf16> to vector<18x4xbf16>
    %18 = vector.extract_strided_slice %17 {offsets = [0, 0], sizes = [16, 4], strides = [1, 1]} : vector<18x4xbf16> to vector<16x4xbf16>
    %c3 = arith.constant 3 : index
    %c0_16 = arith.constant 0 : index
    %c0_17 = arith.constant 0 : index
    %19 = vector.load %arg5[%c3, %c0_16, %c0_17] : memref<9x4x128xbf16, #tpu.memory_space<vmem>>, vector<1x4x128xbf16>
    %20 = vector.shape_cast %19 : vector<1x4x128xbf16> to vector<4x128xbf16>
    %cst_18 = arith.constant dense<0.000000e+00> : vector<16x128xf32>
    %21 = tpu.matmul %18, %20, %cst_18 {dimension_numbers = #tpu.dot_dimension_numbers<[1], [0], [0], [1], [0, 0, 1, 1], [], []>} : vector<16x4xbf16>, vector<4x128xbf16>, vector<16x128xf32> -> vector<16x128xf32>
    %22 = arith.addf %15, %21 : vector<16x128xf32>
    %23 = vector.extract_strided_slice %17 {offsets = [1, 0], sizes = [16, 4], strides = [1, 1]} : vector<18x4xbf16> to vector<16x4xbf16>
    %c4 = arith.constant 4 : index
    %c0_19 = arith.constant 0 : index
    %c0_20 = arith.constant 0 : index
    %24 = vector.load %arg5[%c4, %c0_19, %c0_20] : memref<9x4x128xbf16, #tpu.memory_space<vmem>>, vector<1x4x128xbf16>
    %25 = vector.shape_cast %24 : vector<1x4x128xbf16> to vector<4x128xbf16>
    %cst_21 = arith.constant dense<0.000000e+00> : vector<16x128xf32>
    %26 = tpu.matmul %23, %25, %cst_21 {dimension_numbers = #tpu.dot_dimension_numbers<[1], [0], [0], [1], [0, 0, 1, 1], [], []>} : vector<16x4xbf16>, vector<4x128xbf16>, vector<16x128xf32> -> vector<16x128xf32>
    %27 = arith.addf %22, %26 : vector<16x128xf32>
    %28 = vector.extract_strided_slice %17 {offsets = [2, 0], sizes = [16, 4], strides = [1, 1]} : vector<18x4xbf16> to vector<16x4xbf16>
    %c5 = arith.constant 5 : index
    %c0_22 = arith.constant 0 : index
    %c0_23 = arith.constant 0 : index
    %29 = vector.load %arg5[%c5, %c0_22, %c0_23] : memref<9x4x128xbf16, #tpu.memory_space<vmem>>, vector<1x4x128xbf16>
    %30 = vector.shape_cast %29 : vector<1x4x128xbf16> to vector<4x128xbf16>
    %cst_24 = arith.constant dense<0.000000e+00> : vector<16x128xf32>
    %31 = tpu.matmul %28, %30, %cst_24 {dimension_numbers = #tpu.dot_dimension_numbers<[1], [0], [0], [1], [0, 0, 1, 1], [], []>} : vector<16x4xbf16>, vector<4x128xbf16>, vector<16x128xf32> -> vector<16x128xf32>
    %32 = arith.addf %27, %31 : vector<16x128xf32>
    %c0_25 = arith.constant 0 : index
    %c0_26 = arith.constant 0 : index
    %c0_27 = arith.constant 0 : index
    %c0_28 = arith.constant 0 : index
    %33 = vector.load %arg4[%c0_25, %c0_26, %c0_27, %c0_28] : memref<1x1x18x4xbf16, #tpu.memory_space<vmem>>, vector<1x1x18x4xbf16>
    %34 = vector.shape_cast %33 : vector<1x1x18x4xbf16> to vector<18x4xbf16>
    %35 = vector.extract_strided_slice %34 {offsets = [0, 0], sizes = [16, 4], strides = [1, 1]} : vector<18x4xbf16> to vector<16x4xbf16>
    %c6 = arith.constant 6 : index
    %c0_29 = arith.constant 0 : index
    %c0_30 = arith.constant 0 : index
    %36 = vector.load %arg5[%c6, %c0_29, %c0_30] : memref<9x4x128xbf16, #tpu.memory_space<vmem>>, vector<1x4x128xbf16>
    %37 = vector.shape_cast %36 : vector<1x4x128xbf16> to vector<4x128xbf16>
    %cst_31 = arith.constant dense<0.000000e+00> : vector<16x128xf32>
    %38 = tpu.matmul %35, %37, %cst_31 {dimension_numbers = #tpu.dot_dimension_numbers<[1], [0], [0], [1], [0, 0, 1, 1], [], []>} : vector<16x4xbf16>, vector<4x128xbf16>, vector<16x128xf32> -> vector<16x128xf32>
    %39 = arith.addf %32, %38 : vector<16x128xf32>
    %40 = vector.extract_strided_slice %34 {offsets = [1, 0], sizes = [16, 4], strides = [1, 1]} : vector<18x4xbf16> to vector<16x4xbf16>
    %c7 = arith.constant 7 : index
    %c0_32 = arith.constant 0 : index
    %c0_33 = arith.constant 0 : index
    %41 = vector.load %arg5[%c7, %c0_32, %c0_33] : memref<9x4x128xbf16, #tpu.memory_space<vmem>>, vector<1x4x128xbf16>
    %42 = vector.shape_cast %41 : vector<1x4x128xbf16> to vector<4x128xbf16>
    %cst_34 = arith.constant dense<0.000000e+00> : vector<16x128xf32>
    %43 = tpu.matmul %40, %42, %cst_34 {dimension_numbers = #tpu.dot_dimension_numbers<[1], [0], [0], [1], [0, 0, 1, 1], [], []>} : vector<16x4xbf16>, vector<4x128xbf16>, vector<16x128xf32> -> vector<16x128xf32>
    %44 = arith.addf %39, %43 : vector<16x128xf32>
    %45 = vector.extract_strided_slice %34 {offsets = [2, 0], sizes = [16, 4], strides = [1, 1]} : vector<18x4xbf16> to vector<16x4xbf16>
    %c8 = arith.constant 8 : index
    %c0_35 = arith.constant 0 : index
    %c0_36 = arith.constant 0 : index
    %46 = vector.load %arg5[%c8, %c0_35, %c0_36] : memref<9x4x128xbf16, #tpu.memory_space<vmem>>, vector<1x4x128xbf16>
    %47 = vector.shape_cast %46 : vector<1x4x128xbf16> to vector<4x128xbf16>
    %cst_37 = arith.constant dense<0.000000e+00> : vector<16x128xf32>
    %48 = tpu.matmul %45, %47, %cst_37 {dimension_numbers = #tpu.dot_dimension_numbers<[1], [0], [0], [1], [0, 0, 1, 1], [], []>} : vector<16x4xbf16>, vector<4x128xbf16>, vector<16x128xf32> -> vector<16x128xf32>
    %49 = arith.addf %44, %48 : vector<16x128xf32>
    %c0_38 = arith.constant 0 : index
    %c0_39 = arith.constant 0 : index
    %c0_40 = arith.constant 0 : index
    %c0_41 = arith.constant 0 : index
    %50 = vector.load %arg6[%c0_38, %c0_39, %c0_40, %c0_41] : memref<1x1x16x128xf32, #tpu.memory_space<vmem>>, vector<1x1x16x128xf32>
    %51 = vector.shape_cast %50 : vector<1x1x16x128xf32> to vector<16x128xf32>
    %52 = vector.shape_cast %49 : vector<16x128xf32> to vector<1x1x16x128xf32>
    tpu.vector_store %arg6[%c0_38, %c0_39, %c0_40, %c0_41], %52 {strides = array<i32>} : memref<1x1x16x128xf32, #tpu.memory_space<vmem>>, vector<1x1x16x128xf32>,
    %cst_42 = arith.constant dense<0.000000e+00> : vector<128xf32>
    %53 = vector.multi_reduction <add>, %49, %cst_42 [0] : vector<16x128xf32> to vector<128xf32>
    %54 = vector.shape_cast %53 : vector<128xf32> to vector<1x128xf32>
    %55 = arith.mulf %49, %49 : vector<16x128xf32>
    %cst_43 = arith.constant dense<0.000000e+00> : vector<128xf32>
    %56 = vector.multi_reduction <add>, %55, %cst_43 [0] : vector<16x128xf32> to vector<128xf32>
    %57 = vector.shape_cast %56 : vector<128xf32> to vector<1x128xf32>
    %58 = tpu.concatenate %54, %57 in 0 : vector<1x128xf32>, vector<1x128xf32> -> vector<2x128xf32>
    %c0_44 = arith.constant 0 : index
    %c0_45 = arith.constant 0 : index
    %c0_46 = arith.constant 0 : index
    %c0_47 = arith.constant 0 : index
    %59 = vector.load %arg7[%c0_44, %c0_45, %c0_46, %c0_47] : memref<1x1x2x128xf32, #tpu.memory_space<vmem>>, vector<1x1x2x128xf32>
    %60 = vector.shape_cast %59 : vector<1x1x2x128xf32> to vector<2x128xf32>
    %61 = vector.shape_cast %58 : vector<2x128xf32> to vector<1x1x2x128xf32>
    tpu.vector_store %arg7[%c0_44, %c0_45, %c0_46, %c0_47], %61 {strides = array<i32>} : memref<1x1x2x128xf32, #tpu.memory_space<vmem>>, vector<1x1x2x128xf32>,
    return
  }
  func.func @transform_0(%arg0: i32, %arg1: i32) -> (i32, i32, i32, i32) {
    %c1_i32 = arith.constant 1 : i32
    %0 = arith.muli %arg1, %c1_i32 : i32
    %c0_i32 = arith.constant 0 : i32
    %1 = arith.addi %0, %c0_i32 : i32
    %c0_i32_0 = arith.constant 0 : i32
    %c0_i32_1 = arith.constant 0 : i32
    %c0_i32_2 = arith.constant 0 : i32
    return %arg0, %1, %c0_i32_0, %c0_i32_1 : i32, i32, i32, i32
  }
  func.func @transform_1(%arg0: i32, %arg1: i32) -> (i32, i32, i32, i32) {
    %c1_i32 = arith.constant 1 : i32
    %0 = arith.muli %arg1, %c1_i32 : i32
    %c1_i32_0 = arith.constant 1 : i32
    %1 = arith.addi %0, %c1_i32_0 : i32
    %c0_i32 = arith.constant 0 : i32
    %c0_i32_1 = arith.constant 0 : i32
    %c0_i32_2 = arith.constant 0 : i32
    return %arg0, %1, %c0_i32, %c0_i32_1 : i32, i32, i32, i32
  }
  func.func @transform_2(%arg0: i32, %arg1: i32) -> (i32, i32, i32, i32) {
    %c1_i32 = arith.constant 1 : i32
    %0 = arith.muli %arg1, %c1_i32 : i32
    %c2_i32 = arith.constant 2 : i32
    %1 = arith.addi %0, %c2_i32 : i32
    %c0_i32 = arith.constant 0 : i32
    %c0_i32_0 = arith.constant 0 : i32
    %c0_i32_1 = arith.constant 0 : i32
    return %arg0, %1, %c0_i32, %c0_i32_0 : i32, i32, i32, i32
  }
  func.func @transform_3(%arg0: i32, %arg1: i32) -> (i32, i32, i32) {
    %c0_i32 = arith.constant 0 : i32
    %c0_i32_0 = arith.constant 0 : i32
    %c0_i32_1 = arith.constant 0 : i32
    %c0_i32_2 = arith.constant 0 : i32
    return %c0_i32, %c0_i32_0, %c0_i32_1 : i32, i32, i32
  }
  func.func @transform_4(%arg0: i32, %arg1: i32) -> (i32, i32, i32, i32) {
    %c0_i32 = arith.constant 0 : i32
    %c0_i32_0 = arith.constant 0 : i32
    %c0_i32_1 = arith.constant 0 : i32
    return %arg0, %arg1, %c0_i32, %c0_i32_0 : i32, i32, i32, i32
  }
  func.func @transform_5(%arg0: i32, %arg1: i32) -> (i32, i32, i32, i32) {
    %c0_i32 = arith.constant 0 : i32
    %c0_i32_0 = arith.constant 0 : i32
    %c0_i32_1 = arith.constant 0 : i32
    return %arg0, %arg1, %c0_i32, %c0_i32_0 : i32, i32, i32, i32
  }
}

module attributes {stable_mosaic.version = 11 : i64} {
  func.func @kernel(%arg0: i32, %arg1: i32, %arg2: memref<1x1x18x4xbf16, #tpu.memory_space<vmem>>, %arg3: memref<1x1x18x4xbf16, #tpu.memory_space<vmem>>, %arg4: memref<1x1x18x4xbf16, #tpu.memory_space<vmem>>, %arg5: memref<9x4x128xbf16, #tpu.memory_space<vmem>>, %arg6: memref<1x1x16x128xf32, #tpu.memory_space<vmem>>, %arg7: memref<1x1x2x128xf32, #tpu.memory_space<vmem>>) attributes {dimension_semantics = [#tpu.dimension_semantics<parallel>, #tpu.dimension_semantics<parallel>], iteration_bounds = array<i64: 2, 16>, scalar_prefetch = 0 : i64, scratch_operands = 0 : i64, tpu.core_type = #tpu.core_type<tc>, window_params = [{transform_indices = @transform_0, window_bounds = array<i64: 1, 1, 18, 4>}, {transform_indices = @transform_1, window_bounds = array<i64: 1, 1, 18, 4>}, {transform_indices = @transform_2, window_bounds = array<i64: 1, 1, 18, 4>}, {pipeline_mode = #tpu.pipeline_mode<synchronous>, transform_indices = @transform_3, window_bounds = array<i64: 9, 4, 128>}, {transform_indices = @transform_4, window_bounds = array<i64: 1, 1, 16, 128>}, {transform_indices = @transform_5, window_bounds = array<i64: 1, 1, 2, 128>}]} {
    %c0 = arith.constant 0 : index
    %c0_0 = arith.constant 0 : index
    %c0_1 = arith.constant 0 : index
    %c0_2 = arith.constant 0 : index
    %0 = vector.load %arg2[%c0, %c0_0, %c0_1, %c0_2] : memref<1x1x18x4xbf16, #tpu.memory_space<vmem>>, vector<1x1x18x4xbf16>
    %1 = vector.shape_cast %0 : vector<1x1x18x4xbf16> to vector<18x4xbf16>
    %2 = vector.extract_strided_slice %1 {offsets = [0, 0], sizes = [16, 4], strides = [1, 1]} : vector<18x4xbf16> to vector<16x4xbf16>
    %c0_3 = arith.constant 0 : index
    %c0_4 = arith.constant 0 : index
    %c0_5 = arith.constant 0 : index
    %3 = vector.load %arg5[%c0_3, %c0_4, %c0_5] : memref<9x4x128xbf16, #tpu.memory_space<vmem>>, vector<1x4x128xbf16>
    %4 = vector.shape_cast %3 : vector<1x4x128xbf16> to vector<4x128xbf16>
    %cst = arith.constant dense<0.000000e+00> : vector<16x128xf32>
    %5 = tpu.matmul %2, %4, %cst {dimension_numbers = #tpu.dot_dimension_numbers<[1], [0], [0], [1], [0, 0, 1, 1], [], []>} : vector<16x4xbf16>, vector<4x128xbf16>, vector<16x128xf32> -> vector<16x128xf32>
    %6 = vector.extract_strided_slice %1 {offsets = [1, 0], sizes = [16, 4], strides = [1, 1]} : vector<18x4xbf16> to vector<16x4xbf16>
    %c1 = arith.constant 1 : index
    %c0_6 = arith.constant 0 : index
    %c0_7 = arith.constant 0 : index
    %7 = vector.load %arg5[%c1, %c0_6, %c0_7] : memref<9x4x128xbf16, #tpu.memory_space<vmem>>, vector<1x4x128xbf16>
    %8 = vector.shape_cast %7 : vector<1x4x128xbf16> to vector<4x128xbf16>
    %cst_8 = arith.constant dense<0.000000e+00> : vector<16x128xf32>
    %9 = tpu.matmul %6, %8, %cst_8 {dimension_numbers = #tpu.dot_dimension_numbers<[1], [0], [0], [1], [0, 0, 1, 1], [], []>} : vector<16x4xbf16>, vector<4x128xbf16>, vector<16x128xf32> -> vector<16x128xf32>
    %10 = arith.addf %5, %9 : vector<16x128xf32>
    %11 = vector.extract_strided_slice %1 {offsets = [2, 0], sizes = [16, 4], strides = [1, 1]} : vector<18x4xbf16> to vector<16x4xbf16>
    %c2 = arith.constant 2 : index
    %c0_9 = arith.constant 0 : index
    %c0_10 = arith.constant 0 : index
    %12 = vector.load %arg5[%c2, %c0_9, %c0_10] : memref<9x4x128xbf16, #tpu.memory_space<vmem>>, vector<1x4x128xbf16>
    %13 = vector.shape_cast %12 : vector<1x4x128xbf16> to vector<4x128xbf16>
    %cst_11 = arith.constant dense<0.000000e+00> : vector<16x128xf32>
    %14 = tpu.matmul %11, %13, %cst_11 {dimension_numbers = #tpu.dot_dimension_numbers<[1], [0], [0], [1], [0, 0, 1, 1], [], []>} : vector<16x4xbf16>, vector<4x128xbf16>, vector<16x128xf32> -> vector<16x128xf32>
    %15 = arith.addf %10, %14 : vector<16x128xf32>
    %c0_12 = arith.constant 0 : index
    %c0_13 = arith.constant 0 : index
    %c0_14 = arith.constant 0 : index
    %c0_15 = arith.constant 0 : index
    %16 = vector.load %arg3[%c0_12, %c0_13, %c0_14, %c0_15] : memref<1x1x18x4xbf16, #tpu.memory_space<vmem>>, vector<1x1x18x4xbf16>
    %17 = vector.shape_cast %16 : vector<1x1x18x4xbf16> to vector<18x4xbf16>
    %18 = vector.extract_strided_slice %17 {offsets = [0, 0], sizes = [16, 4], strides = [1, 1]} : vector<18x4xbf16> to vector<16x4xbf16>
    %c3 = arith.constant 3 : index
    %c0_16 = arith.constant 0 : index
    %c0_17 = arith.constant 0 : index
    %19 = vector.load %arg5[%c3, %c0_16, %c0_17] : memref<9x4x128xbf16, #tpu.memory_space<vmem>>, vector<1x4x128xbf16>
    %20 = vector.shape_cast %19 : vector<1x4x128xbf16> to vector<4x128xbf16>
    %cst_18 = arith.constant dense<0.000000e+00> : vector<16x128xf32>
    %21 = tpu.matmul %18, %20, %cst_18 {dimension_numbers = #tpu.dot_dimension_numbers<[1], [0], [0], [1], [0, 0, 1, 1], [], []>} : vector<16x4xbf16>, vector<4x128xbf16>, vector<16x128xf32> -> vector<16x128xf32>
    %22 = arith.addf %15, %21 : vector<16x128xf32>
    %23 = vector.extract_strided_slice %17 {offsets = [1, 0], sizes = [16, 4], strides = [1, 1]} : vector<18x4xbf16> to vector<16x4xbf16>
    %c4 = arith.constant 4 : index
    %c0_19 = arith.constant 0 : index
    %c0_20 = arith.constant 0 : index
    %24 = vector.load %arg5[%c4, %c0_19, %c0_20] : memref<9x4x128xbf16, #tpu.memory_space<vmem>>, vector<1x4x128xbf16>
    %25 = vector.shape_cast %24 : vector<1x4x128xbf16> to vector<4x128xbf16>
    %cst_21 = arith.constant dense<0.000000e+00> : vector<16x128xf32>
    %26 = tpu.matmul %23, %25, %cst_21 {dimension_numbers = #tpu.dot_dimension_numbers<[1], [0], [0], [1], [0, 0, 1, 1], [], []>} : vector<16x4xbf16>, vector<4x128xbf16>, vector<16x128xf32> -> vector<16x128xf32>
    %27 = arith.addf %22, %26 : vector<16x128xf32>
    %28 = vector.extract_strided_slice %17 {offsets = [2, 0], sizes = [16, 4], strides = [1, 1]} : vector<18x4xbf16> to vector<16x4xbf16>
    %c5 = arith.constant 5 : index
    %c0_22 = arith.constant 0 : index
    %c0_23 = arith.constant 0 : index
    %29 = vector.load %arg5[%c5, %c0_22, %c0_23] : memref<9x4x128xbf16, #tpu.memory_space<vmem>>, vector<1x4x128xbf16>
    %30 = vector.shape_cast %29 : vector<1x4x128xbf16> to vector<4x128xbf16>
    %cst_24 = arith.constant dense<0.000000e+00> : vector<16x128xf32>
    %31 = tpu.matmul %28, %30, %cst_24 {dimension_numbers = #tpu.dot_dimension_numbers<[1], [0], [0], [1], [0, 0, 1, 1], [], []>} : vector<16x4xbf16>, vector<4x128xbf16>, vector<16x128xf32> -> vector<16x128xf32>
    %32 = arith.addf %27, %31 : vector<16x128xf32>
    %c0_25 = arith.constant 0 : index
    %c0_26 = arith.constant 0 : index
    %c0_27 = arith.constant 0 : index
    %c0_28 = arith.constant 0 : index
    %33 = vector.load %arg4[%c0_25, %c0_26, %c0_27, %c0_28] : memref<1x1x18x4xbf16, #tpu.memory_space<vmem>>, vector<1x1x18x4xbf16>
    %34 = vector.shape_cast %33 : vector<1x1x18x4xbf16> to vector<18x4xbf16>
    %35 = vector.extract_strided_slice %34 {offsets = [0, 0], sizes = [16, 4], strides = [1, 1]} : vector<18x4xbf16> to vector<16x4xbf16>
    %c6 = arith.constant 6 : index
    %c0_29 = arith.constant 0 : index
    %c0_30 = arith.constant 0 : index
    %36 = vector.load %arg5[%c6, %c0_29, %c0_30] : memref<9x4x128xbf16, #tpu.memory_space<vmem>>, vector<1x4x128xbf16>
    %37 = vector.shape_cast %36 : vector<1x4x128xbf16> to vector<4x128xbf16>
    %cst_31 = arith.constant dense<0.000000e+00> : vector<16x128xf32>
    %38 = tpu.matmul %35, %37, %cst_31 {dimension_numbers = #tpu.dot_dimension_numbers<[1], [0], [0], [1], [0, 0, 1, 1], [], []>} : vector<16x4xbf16>, vector<4x128xbf16>, vector<16x128xf32> -> vector<16x128xf32>
    %39 = arith.addf %32, %38 : vector<16x128xf32>
    %40 = vector.extract_strided_slice %34 {offsets = [1, 0], sizes = [16, 4], strides = [1, 1]} : vector<18x4xbf16> to vector<16x4xbf16>
    %c7 = arith.constant 7 : index
    %c0_32 = arith.constant 0 : index
    %c0_33 = arith.constant 0 : index
    %41 = vector.load %arg5[%c7, %c0_32, %c0_33] : memref<9x4x128xbf16, #tpu.memory_space<vmem>>, vector<1x4x128xbf16>
    %42 = vector.shape_cast %41 : vector<1x4x128xbf16> to vector<4x128xbf16>
    %cst_34 = arith.constant dense<0.000000e+00> : vector<16x128xf32>
    %43 = tpu.matmul %40, %42, %cst_34 {dimension_numbers = #tpu.dot_dimension_numbers<[1], [0], [0], [1], [0, 0, 1, 1], [], []>} : vector<16x4xbf16>, vector<4x128xbf16>, vector<16x128xf32> -> vector<16x128xf32>
    %44 = arith.addf %39, %43 : vector<16x128xf32>
    %45 = vector.extract_strided_slice %34 {offsets = [2, 0], sizes = [16, 4], strides = [1, 1]} : vector<18x4xbf16> to vector<16x4xbf16>
    %c8 = arith.constant 8 : index
    %c0_35 = arith.constant 0 : index
    %c0_36 = arith.constant 0 : index
    %46 = vector.load %arg5[%c8, %c0_35, %c0_36] : memref<9x4x128xbf16, #tpu.memory_space<vmem>>, vector<1x4x128xbf16>
    %47 = vector.shape_cast %46 : vector<1x4x128xbf16> to vector<4x128xbf16>
    %cst_37 = arith.constant dense<0.000000e+00> : vector<16x128xf32>
    %48 = tpu.matmul %45, %47, %cst_37 {dimension_numbers = #tpu.dot_dimension_numbers<[1], [0], [0], [1], [0, 0, 1, 1], [], []>} : vector<16x4xbf16>, vector<4x128xbf16>, vector<16x128xf32> -> vector<16x128xf32>
    %49 = arith.addf %44, %48 : vector<16x128xf32>
    %c0_38 = arith.constant 0 : index
    %c0_39 = arith.constant 0 : index
    %c0_40 = arith.constant 0 : index
    %c0_41 = arith.constant 0 : index
    %50 = vector.load %arg6[%c0_38, %c0_39, %c0_40, %c0_41] : memref<1x1x16x128xf32, #tpu.memory_space<vmem>>, vector<1x1x16x128xf32>
    %51 = vector.shape_cast %50 : vector<1x1x16x128xf32> to vector<16x128xf32>
    %52 = vector.shape_cast %49 : vector<16x128xf32> to vector<1x1x16x128xf32>
    tpu.vector_store %arg6[%c0_38, %c0_39, %c0_40, %c0_41], %52 {strides = array<i32>} : memref<1x1x16x128xf32, #tpu.memory_space<vmem>>, vector<1x1x16x128xf32>,
    %cst_42 = arith.constant dense<0.000000e+00> : vector<128xf32>
    %53 = vector.multi_reduction <add>, %49, %cst_42 [0] : vector<16x128xf32> to vector<128xf32>
    %54 = vector.shape_cast %53 : vector<128xf32> to vector<1x128xf32>
    %55 = arith.mulf %49, %49 : vector<16x128xf32>
    %cst_43 = arith.constant dense<0.000000e+00> : vector<128xf32>
    %56 = vector.multi_reduction <add>, %55, %cst_43 [0] : vector<16x128xf32> to vector<128xf32>
    %57 = vector.shape_cast %56 : vector<128xf32> to vector<1x128xf32>
    %58 = tpu.concatenate %54, %57 in 0 : vector<1x128xf32>, vector<1x128xf32> -> vector<2x128xf32>
    %c0_44 = arith.constant 0 : index
    %c0_45 = arith.constant 0 : index
    %c0_46 = arith.constant 0 : index
    %c0_47 = arith.constant 0 : index
    %59 = vector.load %arg7[%c0_44, %c0_45, %c0_46, %c0_47] : memref<1x1x2x128xf32, #tpu.memory_space<vmem>>, vector<1x1x2x128xf32>
    %60 = vector.shape_cast %59 : vector<1x1x2x128xf32> to vector<2x128xf32>
    %61 = vector.shape_cast %58 : vector<2x128xf32> to vector<1x1x2x128xf32>
    tpu.vector_store %arg7[%c0_44, %c0_45, %c0_46, %c0_47], %61 {strides = array<i32>} : memref<1x1x2x128xf32, #tpu.memory_space<vmem>>, vector<1x1x2x128xf32>,
    return
  }
  func.func @transform_0(%arg0: i32, %arg1: i32) -> (i32, i32, i32, i32) {
    %c1_i32 = arith.constant 1 : i32
    %0 = arith.muli %arg1, %c1_i32 : i32
    %c0_i32 = arith.constant 0 : i32
    %1 = arith.addi %0, %c0_i32 : i32
    %c0_i32_0 = arith.constant 0 : i32
    %c0_i32_1 = arith.constant 0 : i32
    %c0_i32_2 = arith.constant 0 : i32
    return %arg0, %1, %c0_i32_0, %c0_i32_1 : i32, i32, i32, i32
  }
  func.func @transform_1(%arg0: i32, %arg1: i32) -> (i32, i32, i32, i32) {
    %c1_i32 = arith.constant 1 : i32
    %0 = arith.muli %arg1, %c1_i32 : i32
    %c1_i32_0 = arith.constant 1 : i32
    %1 = arith.addi %0, %c1_i32_0 : i32
    %c0_i32 = arith.constant 0 : i32
    %c0_i32_1 = arith.constant 0 : i32
    %c0_i32_2 = arith.constant 0 : i32
    return %arg0, %1, %c0_i32, %c0_i32_1 : i32, i32, i32, i32
  }
  func.func @transform_2(%arg0: i32, %arg1: i32) -> (i32, i32, i32, i32) {
    %c1_i32 = arith.constant 1 : i32
    %0 = arith.muli %arg1, %c1_i32 : i32
    %c2_i32 = arith.constant 2 : i32
    %1 = arith.addi %0, %c2_i32 : i32
    %c0_i32 = arith.constant 0 : i32
    %c0_i32_0 = arith.constant 0 : i32
    %c0_i32_1 = arith.constant 0 : i32
    return %arg0, %1, %c0_i32, %c0_i32_0 : i32, i32, i32, i32
  }
  func.func @transform_3(%arg0: i32, %arg1: i32) -> (i32, i32, i32) {
    %c0_i32 = arith.constant 0 : i32
    %c0_i32_0 = arith.constant 0 : i32
    %c0_i32_1 = arith.constant 0 : i32
    %c0_i32_2 = arith.constant 0 : i32
    return %c0_i32, %c0_i32_0, %c0_i32_1 : i32, i32, i32
  }
  func.func @transform_4(%arg0: i32, %arg1: i32) -> (i32, i32, i32, i32) {
    %c0_i32 = arith.constant 0 : i32
    %c0_i32_0 = arith.constant 0 : i32
    %c0_i32_1 = arith.constant 0 : i32
    return %arg0, %arg1, %c0_i32, %c0_i32_0 : i32, i32, i32, i32
  }
  func.func @transform_5(%arg0: i32, %arg1: i32) -> (i32, i32, i32, i32) {
    %c0_i32 = arith.constant 0 : i32
    %c0_i32_0 = arith.constant 0 : i32
    %c0_i32_1 = arith.constant 0 : i32
    return %arg0, %arg1, %c0_i32, %c0_i32_0 : i32, i32, i32, i32
  }
}

</mosaic_0001>

<bundles_post_ra>
// kernel: tpu_custom_call.1
= control target key start
LH: loop header
LB: loop body
LE: loop exit
PB: predicated region body
PF: predicated region fallthrough
CT: control target
= control target key end

     0   :  { %s1720_s0 = inlined_call_operand.vmem [shape: bf16[2,18,18,4], index: 0, kind: input, shape index: {}]   ;;  %s1721_s1 = inlined_call_operand.vmem [shape: bf16[2,18,18,4], index: 1, kind: input, shape index: {}]   ;;  %s1722_s2 = inlined_call_operand.vmem [shape: bf16[2,18,18,4], index: 2, kind: input, shape index: {}]   ;;  %s1723_s3 = inlined_call_operand.vmem [shape: bf16[9,4,128], index: 3, kind: input, shape index: {}]   ;;  %s1724_s4 = inlined_call_operand.hbm [shape: f32[2,16,16,128], index: 4, kind: output, shape index: {0}]   ;;  %s1725_s5 = inlined_call_operand.hbm [shape: f32[2,16,2,128], index: 5, kind: output, shape index: {1}]  }
   0x1   :  { %1727 = sst [smem:[#allocation9_spill]] %s1720_s0 }
   0x2   :  { %11 = vsyncpa [#allocation3], 0 }
   0x3   :  { %13 = vsyncpa [#allocation3 + $0x1], 0 }
   0x4   :  { %14 = vsyncpa [#allocation5], 0 }
   0x5   :  { %16 = vsyncpa [#allocation5 + $0x1], 0  ;;  %s1462_s18 = smov 0   ;;  %s1464_s19 = smov 0  }
   0x6   :  { %s1466_s20 = smov 0   ;;  %s1468_s21 = smov 0  }
   0x7   :  { %s1470_s22 = smov 0   ;;  %s1472_s23 = smov 0  }
   0x8   :  { %s1474_s24 = smov 0   ;;  %s1476_s25 = smov 0  }
   0x9 LB: > { %s1098_s26 = sadd.s32 4294967295, %s1424_s25   ;;  %s1099_s27 = sadd.s32 4294967294, %s1424_s25   ;;  %s1424_s25 = sphi %s1476_s25, %s22_s25   ;;  %s1420_s24 = sphi %s1474_s24, %s1739_s24   ;;  %s1416_s23 = sphi %s1472_s23, %s1738_s23   ;;  %s1412_s22 = sphi %s1470_s22, %s1737_s22   ;;  %s1408_s21 = sphi %s1468_s21, %s1736_s21   ;;  %s1404_s20 = sphi %s1466_s20, %s1735_s20   ;;  %s1400_s19 = sphi %s1464_s19, %s1734_s19   ;;  %s1396_s18 = sphi %s1462_s18, %s1733_s18  }
   0xa   : > { %s31_s28 = sadd.s32 1, %s1416_s23  ;;  %s34_s29 = sadd.s32 1, %s1420_s24 }
   0xb   : > { %p32_p0 = scmp.ge.s32.totalorder %s31_s28, 16  ;;  %p162_p1 = scmp.ne.s32.totalorder %s1404_s20, %s1400_s19 }
   0xc   : > { %p163_p2 = scmp.eq.s32.totalorder %s1098_s26, 31  ;;  %p168_p5 = scmp.ne.s32.totalorder %s1400_s19, %s1396_s18 }
   0xd   : > { %s1741_s28 = smov (%p32_p0, %s31_s28), 0  ;;  %s1743_s29 = smov (!%p32_p0, %s34_s29), %s1420_s24 }
   0xe   : > { %s148_s30 = ssub.s32 %s1416_s23, %s1741_s28  ;;  %p1513_p3 = por %p163_p2, %p162_p1 }
   0xf   : > { %p36_p4 = scmp.ge.s32.totalorder %s1743_s29, 2  ;;  %p169_p6 = scmp.eq.s32.totalorder %s1099_s27, 31 }
  0x10   : > { %p1102_p7 = scmp.ge.s32.totalorder %s1424_s25, 1  ;;  %p258_p9 = scmp.lt.s32.totalorder %s1424_s25, 33 }
  0x11   : > { %s1745_s29 = smov (%p36_p4, %s1743_s29), 0  ;;  %p1522_p8 = por %p169_p6, %p168_p5 }
  0x12   : > { %1729 = sst [smem:[#allocation8_spill]] %s1745_s29  ;;  %s147_s8 = ssub.s32 %s1420_s24, %s1745_s29 }
  0x13   : > { %s152_s9 = sadd.s32 1, %s1404_s20  ;;  %s149_s10 = sor.u32 %s148_s30, %s147_s8 }
  0x14   : > { %p259_p10 = pnand %p1102_p7, %p258_p9  ;;  %p150_p11 = scmp.eq.s32.totalorder %s149_s10, 0 }
  0x15   : > { %p315_p12 = scmp.lt.s32.totalorder (!%p259_p10), %s1412_s22, 1  ;;  %p317_p13 = scmp.lt.s32.totalorder (!%p259_p10), %s1408_s21, 17 }
  0x16   : > { %s1531_s11 = scalar_select %p150_p11, %s1404_s20, %s152_s9  }
  0x17   : > { %262 = sbr.rel (%p259_p10) target bundleno = 316 (0x13c), region = 36  ;;  %s324_s27 = sadd.s32 (!%p259_p10), 1, %s1408_s21 }
  0x18   : > { %s335_s8 = sadd.s32 (!%p259_p10), 2, %s1408_s21  ;;  %p327_p0 = scmp.lt.s32.totalorder (!%p259_p10), %s324_s27, 17 }
  0x19   : > { %p338_p1 = scmp.lt.s32.totalorder (!%p259_p10), %s335_s8, 17  ;;  %s1731_s0 = sld [smem:[#allocation9_spill]] (!%p259_p10) }
  0x1a   : > { %s1632_s14 = sand.u32 (!%p259_p10), 1, %s1400_s19  }
  0x1b   : > { %s1103_s15 = sshll.u32 (!%p259_p10), %s1632_s14, 4  ;;  %s902_s12 = scalar_lea.sflag (!%p259_p10), [#allocation3], %s1632_s14 }
  0x1c   : > { %v1108_v0 = vld [vmem:[%s1723_s3 + $0x2] sm:$0x3]  ;;  %vm378_vm0 = vcmask 1041408   ;;  %v350_v1 = vld [vmem:[%s1723_s3] sm:$0x3]  ;;  %v1426_v2 = vmov 0.0  }
  0x1d   : > { %1158 = vmatprep.subr.bf16.mxu0 %v1426_v2  ;;  %v380_v3 = vsel %vm378_vm0, %v1108_v0, 0  ;;  %1164 = vmatprep.subr.bf16.mxu1 %v1426_v2  ;;  %v426_v4 = vsel %vm378_vm0, %v350_v1, 0  ;;  %vm1427_vm1 = vmmov 0   ;;  %s316_s16 = scalar_select %p315_p12, %s1412_s22, 1  ;;  %v1115_v5 = vld [vmem:[%s1723_s3 + $0x6] sm:$0x3] }
  0x1e   : > { %1159 = vmatpush3.bf16.msra.mxu0 %v380_v3  ;;  %1165 = vmatpush3.bf16.msra.mxu1 %v426_v4  ;;  %s318_s17 = scalar_select %p317_p13, %s1408_s21, 17  ;;  %vm374_vm2 = vcmask 31744   ;;  %v538_v8 = vsel %vm378_vm0, %v1115_v5, 0  ;;  %v1113_v14 = vld [vmem:[%s1723_s3 + $0x4] sm:$0x3]  ;;  %vm471_vm4 = vcmask 1046528  }
  0x1f   : > { %1160 = vmatprep.mubr.msk.bf16.mxu0 %vm1427_vm1, %v1426_v2  ;;  %1166 = vmatprep.mubr.msk.bf16.mxu1 %vm1427_vm1, %v1426_v2  ;;  %s1553_s26 = smul.u32 54, %s316_s16  ;;  %s1747_s27 = smov (!%p327_p0, %s324_s27), 17  ;;  %vm361_vm3 = vsmask.f32 7424  ;;  %v1121_v15 = vld [vmem:[%s1723_s3 + $0xa] sm:$0x3] }
  0x20   : > { %1170 = vmatprep.subr.bf16.mxu0 %v1426_v2  ;;  %1176 = vmatprep.subr.bf16.mxu1 %v1426_v2  ;;  %s1212_s30 = smul.u32 3, %s318_s17  ;;  %s1749_s8 = smov (!%p338_p1, %s335_s8), 17  ;;  %v479_v17 = vsel %vm378_vm0, %v1113_v14, 0  ;;  %v657_v20 = vsel %vm378_vm0, %v1121_v15, 0  ;;  %v1118_v26 = vld [vmem:[%s1723_s3 + $0x8] sm:$0x3] }
  0x21   : > { %s1214_s16 = smul.u32 3, %s1747_s27  ;;  %v1126_v35 = vld [vmem:[%s1723_s3 + $0xe] sm:$0x3]  ;;  %v603_v36 = vsel %vm378_vm0, %v1118_v26, 0  ;;  %v1123_v44 = vld [vmem:[%s1723_s3 + $0xc] sm:$0x3] }
  0x22   : > { %s321_s9 = sadd.s32 %s1553_s26, %s1212_s30  ;;  %s1215_s17 = smul.u32 3, %s1749_s8  ;;  %v781_v41 = vsel %vm378_vm0, %v1126_v35, 0  ;;  %v716_v48 = vsel %vm378_vm0, %v1123_v44, 0  ;;  %v1129_v50 = vld [vmem:[%s1723_s3 + $0x10] sm:$0x3] }
  0x23   : > { %s1105_s10 = sshll.u32 %s321_s9, 2  ;;  %s331_s9 = sadd.s32 %s1214_s16, %s1553_s26  ;;  %v835_v51 = vsel %vm378_vm0, %v1129_v50, 0 }
  0x24   : > { %s323_s29 = scalar_lea.vmem %s1731_s0, %s1105_s10  ;;  %s1106_s10 = sshll.u32 %s331_s9, 2 }
  0x25   : > { %v1296_v6 = vld [vmem:[%s323_s29] sm:$0xff]   ;;  %v1297_v7 = vld [vmem:[%s323_s29 + $0x8] ss:$0 sps:$4 sm:$0x11]   ;;  %s342_s27 = sadd.s32 %s1215_s17, %s1553_s26  ;;  %s333_s8 = scalar_lea.vmem %s1721_s1, %s1106_s10 }
  0x26   : > { %v363_v9 = vshrl.u32 %v1296_v6, 16  ;;  %v365_v10 = vshll.u32 %v1296_v6, 16  ;;  %v370_v11 = vshll.u32 %v1297_v7, 16  ;;  %1167 = vmatmul.mubr.msk.bf16.vlgmr.msra.gmra.mxu1 %vm374_vm2, %v1296_v6  ;;  %s1107_s0 = sshll.u32 %s342_s27, 2  ;;  %v1298_v18 = vld [vmem:[%s333_s8] sm:$0xff]   ;;  %v472_v22 = vrot.slane %v1296_v6, 1 }
  0x27   : > { %1177 = vmatpush3.bf16.msra.mxu1 %v538_v8  ;;  %1178 = vmatprep.mubr.msk.bf16.mxu1 %vm1427_vm1, %v1426_v2  ;;  %s344_s29 = scalar_lea.vmem %s1722_s2, %s1107_s0  ;;  %v1299_v23 = vld [vmem:[%s333_s8 + $0x8] ss:$0 sps:$4 sm:$0x11]   ;;  %v473_v24 = vrot.slane %v1297_v7, 1  ;;  %v590_v25 = vshll.u32 %v1298_v18, 16  ;;  %v650_v27 = vrot.slane %v1298_v18, 1 }
  0x28   : > { %v367_v12 = vrot.slane %v365_v10, 1  ;;  %v372_v13 = vrot.slane %v370_v11, 1  ;;  %1188 = vmatprep.subr.bf16.mxu1 %v1426_v2  ;;  %v1300_v21 = vld [vmem:[%s344_s29] sm:$0xff]   ;;  %v651_v28 = vrot.slane %v1299_v23, 1  ;;  %v588_v32 = vshrl.u32 %v1298_v18, 16  ;;  %s1133_s8 = sshll.u32 %s1408_s21, 1 }
  0x29   : > { %v1301_v29 = vld [vmem:[%s344_s29 + $0x8] ss:$0 sps:$4 sm:$0x11]   ;;  %v768_v30 = vshll.u32 %v1300_v21, 16  ;;  %v474_v31 = vsel %vm471_vm4, %v472_v22, %v473_v24  ;;  %v592_v33 = vrot.slane %v590_v25, 1  ;;  %v595_v34 = vshll.u32 %v1299_v23, 16 }
  0x2a   : > { %v368_v16 = vor.u32 %v367_v12, %v363_v9  ;;  %v652_v37 = vsel %vm471_vm4, %v650_v27, %v651_v28  ;;  %v766_v38 = vshrl.u32 %v1300_v21, 16  ;;  %v773_v40 = vshll.u32 %v1301_v29, 16  ;;  %s1134_s30 = sshll.u32 %s1412_s22, 5  ;;  %s307_s29 = scalar_lea.vmem [#allocation2], %s1103_s15 }
  0x2b   : > { %v770_v39 = vrot.slane %v768_v30, 1  ;;  %v593_v42 = vor.u32 %v592_v33, %v588_v32  ;;  %v597_v43 = vrot.slane %v595_v34, 1  ;;  %v828_v52 = vrot.slane %v1300_v21, 1  ;;  %s919_s16 = sadd.s32 %s1134_s30, %s1133_s8  ;;  %s922_s0 = sshll.u32 %s307_s29, 4  ;;  %s1637_s0 = int_to_ptr.vmem [resolvable:$true] %s922_s0 }
  0x2c   : > { %v373_v19 = vsel %vm361_vm3, %v368_v16, %v372_v13  ;;  %v775_v46 = vrot.slane %v773_v40, 1  ;;  %v829_v53 = vrot.slane %v1301_v29, 1  ;;  %s1135_s26 = sshll.u32 %s919_s16, 7  ;;  %s1302_s13 = scalar_lea.vmem %s1637_s0, 256 }
  0x2d   : > { %1161 = vmatmul.mubr.msk.bf16.vlgmr.msra.gmra.mxu0 %vm374_vm2, %v373_v19  ;;  %v771_v45 = vor.u32 %v770_v39, %v766_v38  ;;  %v598_v47 = vsel %vm361_vm3, %v593_v42, %v597_v43  ;;  %s1642_s10 = scalar_lea.hbm %s1724_s4, %s1135_s26  ;;  %p1303_p2 = scmp.ne.s32.totalorder %s1637_s0, %s1302_s13 }
  0x2e   : > { %1171 = vmatpush3.bf16.msra.mxu0 %v479_v17  ;;  %1172 = vmatprep.mubr.msk.bf16.mxu0 %vm1427_vm1, %v1426_v2  ;;  %v830_v54 = vsel %vm471_vm4, %v828_v52, %v829_v53  ;;  %s1428_s27 = smov [#allocation2]  }
  0x2f   : > { %1182 = vmatprep.subr.bf16.mxu0 %v1426_v2  ;;  %1179 = vmatmul.mubr.msk.bf16.vlgmr.msra.gmra.mxu1 %vm374_vm2, %v1298_v18  ;;  %v776_v49 = vsel %vm361_vm3, %v771_v45, %v775_v46  ;;  %p1304_p4 = pnand %p1303_p2, %p1513_p3  ;;  %s1306_s15 = sshll.u32 %s1428_s27, 4  ;;  %s1307_s15 = int_to_ptr.vmem [resolvable:$false] %s1306_s15 }
  0x30   : > { %1189 = vmatpush3.bf16.msra.mxu1 %v657_v20  ;;  %1190 = vmatprep.mubr.msk.bf16.mxu1 %vm1427_vm1, %v1426_v2  ;;  %s1308_s8 = scalar_lea.vmem %s1307_s15, 512  ;;  %p1309_p6 = scmp.lt.s32.totalorder %s1637_s0, %s1307_s15 }
  0x31   : > { %1200 = vmatprep.subr.bf16.mxu1 %v1426_v2  ;;  %p1305_p5 = pneg %p1304_p4  ;;  %p1310_p7 = scmp.lt.s32.totalorder %s1308_s8, %s1302_s13 }
  0x33   : > { %p1311_p9 = por %p1310_p7, %p1309_p6 }
  0x35   : > { %1173 = vmatmul.mubr.msk.bf16.vlgmr.msra.gmra.mxu0 %vm374_vm2, %v474_v31  ;;  %p1312_p10 = pnand %p1311_p9, %p1305_p5 }
  0x36   : > { %1183 = vmatpush3.bf16.msra.mxu0 %v603_v36  ;;  %1184 = vmatprep.mubr.msk.bf16.mxu0 %vm1427_vm1, %v1426_v2 }
  0x37   : > { %1194 = vmatprep.subr.bf16.mxu0 %v1426_v2  ;;  %1191 = vmatmul.mubr.msk.bf16.vlgmr.msra.gmra.mxu1 %vm374_vm2, %v652_v37 }
  0x38   : > { %1201 = vmatpush3.bf16.msra.mxu1 %v781_v41  ;;  %1202 = vmatprep.mubr.msk.bf16.mxu1 %vm1427_vm1, %v1426_v2 }
  0x3d   : > { %1185 = vmatmul.mubr.msk.bf16.vlgmr.msra.gmra.mxu0 %vm374_vm2, %v598_v47 }
  0x3e   : > { %1195 = vmatpush3.bf16.msra.mxu0 %v716_v48  ;;  %1196 = vmatprep.mubr.msk.bf16.mxu0 %vm1427_vm1, %v1426_v2 }
  0x3f   : > { %1206 = vmatprep.subr.bf16.mxu0 %v1426_v2  ;;  %1203 = vmatmul.mubr.msk.bf16.vlgmr.msra.gmra.mxu1 %vm374_vm2, %v776_v49 }
  0x45   : > { %1197 = vmatmul.mubr.msk.bf16.vlgmr.msra.gmra.mxu0 %vm374_vm2, %v1300_v21 }
  0x46   : > { %1207 = vmatpush3.bf16.msra.mxu0 %v835_v51  ;;  %1208 = vmatprep.mubr.msk.bf16.mxu0 %vm1427_vm1, %v1426_v2 }
  0x4d   : > { %1209 = vmatmul.mubr.msk.bf16.vlgmr.msra.gmra.mxu0 %vm374_vm2, %v830_v54 }
  0xe6   : > { %v462_v55 = vpop.f32.mrf.mxu1 }
  0xe8   : > { %v1168_v56 = vpop.f32.mrf.mxu1 }
  0xea   : > { %v465_v57 = vpop.f32.mrf.mxu1 }
  0xec   : > { %v1169_v58 = vpop.f32.mrf.mxu1 }
  0xed   : > { %v416_v59 = vpop.f32.mrf.mxu0 }
  0xee   : > { %v463_v8 = vadd.f32 %v462_v55, %v416_v59 }
  0xef   : > { %v1162_v60 = vpop.f32.mrf.mxu0  ;;  %v574_v61 = vpop.f32.mrf.mxu1 }
  0xf1   : > { %v419_v62 = vpop.f32.mrf.mxu0  ;;  %v1180_v63 = vpop.f32.mrf.mxu1 }
  0xf2   : > { %v466_v14 = vadd.f32 %v465_v57, %v419_v62 }
  0xf3   : > { %v1163_v0 = vpop.f32.mrf.mxu0  ;;  %v577_v1 = vpop.f32.mrf.mxu1 }
  0xf5   : > { %v515_v3 = vpop.f32.mrf.mxu0  ;;  %v1181_v4 = vpop.f32.mrf.mxu1 }
  0xf6   : > { %v522_v11 = vadd.f32 %v515_v3, %v463_v8 }
  0xf7   : > { %v1174_v2 = vpop.f32.mrf.mxu0  ;;  %v693_v5 = vpop.f32.mrf.mxu1 }
  0xf8   : > { %v581_v17 = vadd.f32 %v574_v61, %v522_v11 }
  0xf9   : > { %v518_v6 = vpop.f32.mrf.mxu0  ;;  %v1192_v7 = vpop.f32.mrf.mxu1 }
  0xfa   : > { %v523_v18 = vadd.f32 %v518_v6, %v466_v14 }
  0xfb   : > { %v1175_v9 = vpop.f32.mrf.mxu0  ;;  %v696_v10 = vpop.f32.mrf.mxu1 }
  0xfc   : > { %v582_v24 = vadd.f32 %v577_v1, %v523_v18 }
  0xfd   : > { %v639_v12 = vpop.f32.mrf.mxu0  ;;  %v1193_v13 = vpop.f32.mrf.mxu1 }
  0xfe   : > { %v646_v21 = vadd.f32 %v639_v12, %v581_v17 }
  0xff   : > { %v1186_v15 = vpop.f32.mrf.mxu0  ;;  %v817_v16 = vpop.f32.mrf.mxu1 }
 0x100   : > { %v700_v27 = vadd.f32 %v693_v5, %v646_v21 }
 0x101   : > { %v642_v19 = vpop.f32.mrf.mxu0  ;;  %v1204_v20 = vpop.f32.mrf.mxu1 }
 0x102   : > { %v647_v28 = vadd.f32 %v642_v19, %v582_v24 }
 0x103   : > { %v1187_v22 = vpop.f32.mrf.mxu0  ;;  %v820_v23 = vpop.f32.mrf.mxu1 }
 0x104   : > { %v701_v32 = vadd.f32 %v696_v10, %v647_v28 }
 0x105   : > { %v752_v25 = vpop.f32.mrf.mxu0  ;;  %v1205_v26 = vpop.f32.mrf.mxu1 }
 0x106   : > { %v759_v30 = vadd.f32 %v752_v25, %v700_v27 }
 0x107   : > { %v1198_v29 = vpop.f32.mrf.mxu0 }
 0x108   : > { %v824_v34 = vadd.f32 %v817_v16, %v759_v30 }
 0x109   : > { %v755_v31 = vpop.f32.mrf.mxu0 }
 0x10a   : > { %v760_v35 = vadd.f32 %v755_v31, %v701_v32 }
 0x10b   : > { %v1199_v33 = vpop.f32.mrf.mxu0 }
 0x10c   : > { %v825_v39 = vadd.f32 %v820_v23, %v760_v35 }
 0x10d   : > { %v871_v36 = vpop.f32.mrf.mxu0 }
 0x10e   : > { %v878_v37 = vadd.f32 %v871_v36, %v824_v34 }
 0x10f   : > { %v1210_v38 = vpop.f32.mrf.mxu0 }
 0x110   : > { %880 = vst [vmem:[%s307_s29] sm:$0xff] %v878_v37  ;;  %v889_v43 = vmul.f32 %v878_v37, %v878_v37 }
 0x111   : > { %v874_v40 = vpop.f32.mrf.mxu0 }
 0x112   : > { %v879_v41 = vadd.f32 %v874_v40, %v825_v39 }
 0x113   : > { %v1211_v42 = vpop.f32.mrf.mxu0 }
 0x114   : > { %881 = vst [vmem:[%s307_s29 + $0x8] sm:$0xff] %v879_v41  ;;  %v882_v44 = vadd.f32 %v879_v41, %v878_v37  ;;  %v890_v45 = vmul.f32 %v879_v41, %v879_v41 }
 0x115   : > { %1315 = shalt.err (!%p1312_p10)
}
 0x116   : > { %s1316_s30 = scalar_lea.hbm %s1642_s10, 256  ;;  %s1320_s26 = scalar_lea.hbm %s1724_s4, 8192 }
 0x117   : > { %p1317_p11 = scmp.ne.s32.totalorder %s1642_s10, %s1316_s30  ;;  %p1321_p0 = scmp.lt.s32.totalorder %s1642_s10, %s1724_s4 }
 0x118   : > { %p1322_p1 = scmp.lt.s32.totalorder %s1320_s26, %s1316_s30 }
 0x119   : > { %p1318_p12 = pnand %p1317_p11, %p1513_p3 }
 0x11a   : > { %p1323_p2 = por %p1322_p1, %p1321_p0 }
 0x11b   : > { %p1319_p13 = pneg %p1318_p12 }
 0x11d   : > { %p1324_p4 = pnand %p1323_p2, %p1319_p13 }
 0x11f   : > { %1327 = shalt.err (!%p1324_p4)
}
 0x120   : > { %s1429_s13 = smov 128   ;;  %s1430_s27 = smov 8   ;;  %v883_v46 = vrot.slane %v882_v44, 4  ;;  %v891_v47 = vadd.f32 %v890_v45, %v889_v43  ;;  %vm898_vm5 = vcmask 1040384  }
 0x121   : > { %1216 = dma.vmem_to_hbm [thread:$0]  (%p1513_p3), %s1637_s0, 256, %s1642_s10, %s902_s12, %s1429_s13, %s1429_s13, %s1430_s27  }
 0x122   : > { %v884_v48 = vadd.f32 %v883_v46, %v882_v44  ;;  %v892_v49 = vrot.slane %v891_v47, 4  ;;  %s1104_s15 = sshll.u32 %s1632_s14, 1  ;;  %s1136_s8 = sshll.u32 %s1412_s22, 4 }
 0x123   : > { %s936_s30 = sadd.s32 %s1408_s21, %s1136_s8  ;;  %s314_s29 = scalar_lea.vmem [#allocation4], %s1104_s15 }
 0x124   : > { %v885_v50 = vrot.slane %v884_v48, 2  ;;  %v893_v51 = vadd.f32 %v892_v49, %v891_v47  ;;  %s1137_s16 = sshll.u32 %s936_s30, 5  ;;  %s940_s26 = sshll.u32 %s314_s29, 4  ;;  %s941_s26 = int_to_ptr.vmem [resolvable:$true] %s940_s26 }
 0x125   : > { %s1673_s12 = scalar_lea.hbm %s1725_s5, %s1137_s16  ;;  %s907_s22 = scalar_lea.sflag [#allocation5], %s1632_s14 }
 0x126   : > { %v886_v52 = vadd.f32 %v885_v50, %v884_v48  ;;  %v894_v53 = vrot.slane %v893_v51, 2  ;;  %s1328_s21 = scalar_lea.vmem %s941_s26, 32  ;;  %s1431_s17 = smov [#allocation4]  }
 0x127   : > { %p1329_p5 = scmp.ne.s32.totalorder %s941_s26, %s1328_s21  ;;  %s1332_s9 = sshll.u32 %s1431_s17, 4  ;;  %s1333_s9 = int_to_ptr.vmem [resolvable:$false] %s1332_s9 }
 0x128   : > { %v887_v54 = vrot.slane %v886_v52, 1  ;;  %v895_v55 = vadd.f32 %v894_v53, %v893_v51  ;;  %s1334_s13 = scalar_lea.vmem %s1333_s9, 64  ;;  %p1335_p9 = scmp.lt.s32.totalorder %s941_s26, %s1333_s9 }
 0x129   : > { %p1330_p6 = pnand %p1329_p5, %p1513_p3  ;;  %p1336_p10 = scmp.lt.s32.totalorder %s1334_s13, %s1328_s21 }
 0x12a   : > { %v896_v56 = vrot.slane %v895_v55, 1  ;;  %v888_v57 = vadd.f32 %v887_v54, %v886_v52 }
 0x12b   : > { %p1331_p7 = pneg %p1330_p6  ;;  %p1337_p11 = por %p1336_p10, %p1335_p9 }
 0x12c   : > { %v897_v58 = vadd.f32 %v896_v56, %v895_v55 }
 0x12d   : > { %p1338_p12 = pnand %p1337_p11, %p1331_p7 }
 0x12e   : > { %v899_v59 = vsel %vm898_vm5, %v888_v57, %v897_v58 }
 0x12f   : > { %900 = vst [vmem:[%s314_s29] sm:$0x3] %v899_v59 }
 0x130   : > { %1341 = shalt.err (!%p1338_p12)
}
 0x131   : > { %s1342_s27 = scalar_lea.hbm %s1673_s12, 32  ;;  %s1346_s8 = scalar_lea.hbm %s1725_s5, 1024 }
 0x132   : > { %p1343_p13 = scmp.ne.s32.totalorder %s1673_s12, %s1342_s27  ;;  %p1347_p2 = scmp.lt.s32.totalorder %s1673_s12, %s1725_s5 }
 0x133   : > { %p1348_p4 = scmp.lt.s32.totalorder %s1346_s8, %s1342_s27 }
 0x134   : > { %p1344_p0 = pnand %p1343_p13, %p1513_p3 }
 0x135   : > { %p1349_p5 = por %p1348_p4, %p1347_p2 }
 0x136   : > { %p1345_p1 = pneg %p1344_p0 }
 0x138   : > { %p1350_p6 = pnand %p1349_p5, %p1345_p1 }
 0x13a   : > { %1353 = shalt.err (!%p1350_p6)
}
 0x13b   : > { %1217 = dma.vmem_to_hbm [thread:$0]  (%p1513_p3), %s941_s26, 32, %s1673_s12, %s907_s22  }
 0x13c PF: > { %p1227_p7 = scmp.ge.s32.totalorder %s1424_s25, 2  ;;  %s952_s29 = sand.u32 1, %s1396_s18  }
 0x13d   : > { %s953_s0 = scalar_lea.sflag [#allocation3], %s952_s29 }
 0x13e   : > { %p1221_p9 = pnand %p1227_p7, %p1522_p8 }
 0x140   : > { %p1222_p10 = pneg %p1221_p9 }
 0x142   : > { %1387 = dma.done.wait (%p1222_p10), %s953_s0, 256  }
 0x143   : > { %1389 = vsyncadd (%p1222_p10), %s953_s0, 4294967040  ;;  %s962_s10 = scalar_lea.sflag [#allocation5], %s952_s29 }
 0x144   : > { %1391 = dma.done.wait (%p1222_p10), %s962_s10, 32  }
 0x145   : > { %1393 = vsyncadd (%p1222_p10), %s962_s10, 4294967264  ;;  %s22_s25 = sadd.s32 1, %s1424_s25   ;;  %s1732_s6 = sld [smem:[#allocation8_spill]] }
 0x146   : > { %p19_p11 = scmp.ge.s32.totalorder %s22_s25, 34   ;;  %s1733_s18 = smov %s1400_s19 }
 0x147   : > { %s1734_s19 = smov %s1404_s20  ;;  %s1735_s20 = smov %s1531_s11 }
 0x148   : > { %s1736_s21 = smov %s1416_s23  ;;  %s1737_s22 = smov %s1420_s24 }
 0x149   : > { %s1738_s23 = smov %s1741_s28  ;;  %21 = sbr.rel (!%p19_p11) target bundleno = 9 (0x9), region = 102 }
 0x14b   : > { %s1739_s24 = smov %s1732_s6 }
 0x14e   :  { %967 = vsyncpa [#allocation3], 1 }
 0x14f   :  { %969 = vsyncpa [#allocation3 + $0x1], 1 }
 0x150   :  { %970 = vsyncpa [#allocation5], 1 }
 0x151   :  { %972 = vsyncpa [#allocation5 + $0x1], 1 }

// kernel: tpu_custom_call.1
= control target key start
LH: loop header
LB: loop body
LE: loop exit
PB: predicated region body
PF: predicated region fallthrough
CT: control target
= control target key end

     0   :  { %s1720_s0 = inlined_call_operand.vmem [shape: bf16[2,18,18,4], index: 0, kind: input, shape index: {}]   ;;  %s1721_s1 = inlined_call_operand.vmem [shape: bf16[2,18,18,4], index: 1, kind: input, shape index: {}]   ;;  %s1722_s2 = inlined_call_operand.vmem [shape: bf16[2,18,18,4], index: 2, kind: input, shape index: {}]   ;;  %s1723_s3 = inlined_call_operand.vmem [shape: bf16[9,4,128], index: 3, kind: input, shape index: {}]   ;;  %s1724_s4 = inlined_call_operand.hbm [shape: f32[2,16,16,128], index: 4, kind: output, shape index: {0}]   ;;  %s1725_s5 = inlined_call_operand.hbm [shape: f32[2,16,2,128], index: 5, kind: output, shape index: {1}]  }
   0x1   :  { %1727 = sst [smem:[#allocation9_spill]] %s1720_s0 }
   0x2   :  { %11 = vsyncpa [#allocation3], 0 }
   0x3   :  { %13 = vsyncpa [#allocation3 + $0x1], 0 }
   0x4   :  { %14 = vsyncpa [#allocation5], 0 }
   0x5   :  { %16 = vsyncpa [#allocation5 + $0x1], 0  ;;  %s1462_s18 = smov 0   ;;  %s1464_s19 = smov 0  }
   0x6   :  { %s1466_s20 = smov 0   ;;  %s1468_s21 = smov 0  }
   0x7   :  { %s1470_s22 = smov 0   ;;  %s1472_s23 = smov 0  }
   0x8   :  { %s1474_s24 = smov 0   ;;  %s1476_s25 = smov 0  }
   0x9 LB: > { %s1098_s26 = sadd.s32 4294967295, %s1424_s25   ;;  %s1099_s27 = sadd.s32 4294967294, %s1424_s25   ;;  %s1424_s25 = sphi %s1476_s25, %s22_s25   ;;  %s1420_s24 = sphi %s1474_s24, %s1739_s24   ;;  %s1416_s23 = sphi %s1472_s23, %s1738_s23   ;;  %s1412_s22 = sphi %s1470_s22, %s1737_s22   ;;  %s1408_s21 = sphi %s1468_s21, %s1736_s21   ;;  %s1404_s20 = sphi %s1466_s20, %s1735_s20   ;;  %s1400_s19 = sphi %s1464_s19, %s1734_s19   ;;  %s1396_s18 = sphi %s1462_s18, %s1733_s18  }
   0xa   : > { %s31_s28 = sadd.s32 1, %s1416_s23  ;;  %s34_s29 = sadd.s32 1, %s1420_s24 }
   0xb   : > { %p32_p0 = scmp.ge.s32.totalorder %s31_s28, 16  ;;  %p162_p1 = scmp.ne.s32.totalorder %s1404_s20, %s1400_s19 }
   0xc   : > { %p163_p2 = scmp.eq.s32.totalorder %s1098_s26, 31  ;;  %p168_p5 = scmp.ne.s32.totalorder %s1400_s19, %s1396_s18 }
   0xd   : > { %s1741_s28 = smov (%p32_p0, %s31_s28), 0  ;;  %s1743_s29 = smov (!%p32_p0, %s34_s29), %s1420_s24 }
   0xe   : > { %s148_s30 = ssub.s32 %s1416_s23, %s1741_s28  ;;  %p1513_p3 = por %p163_p2, %p162_p1 }
   0xf   : > { %p36_p4 = scmp.ge.s32.totalorder %s1743_s29, 2  ;;  %p169_p6 = scmp.eq.s32.totalorder %s1099_s27, 31 }
  0x10   : > { %p1102_p7 = scmp.ge.s32.totalorder %s1424_s25, 1  ;;  %p258_p9 = scmp.lt.s32.totalorder %s1424_s25, 33 }
  0x11   : > { %s1745_s29 = smov (%p36_p4, %s1743_s29), 0  ;;  %p1522_p8 = por %p169_p6, %p168_p5 }
  0x12   : > { %1729 = sst [smem:[#allocation8_spill]] %s1745_s29  ;;  %s147_s8 = ssub.s32 %s1420_s24, %s1745_s29 }
  0x13   : > { %s152_s9 = sadd.s32 1, %s1404_s20  ;;  %s149_s10 = sor.u32 %s148_s30, %s147_s8 }
  0x14   : > { %p259_p10 = pnand %p1102_p7, %p258_p9  ;;  %p150_p11 = scmp.eq.s32.totalorder %s149_s10, 0 }
  0x15   : > { %p315_p12 = scmp.lt.s32.totalorder (!%p259_p10), %s1412_s22, 1  ;;  %p317_p13 = scmp.lt.s32.totalorder (!%p259_p10), %s1408_s21, 17 }
  0x16   : > { %s1531_s11 = scalar_select %p150_p11, %s1404_s20, %s152_s9  }
  0x17   : > { %262 = sbr.rel (%p259_p10) target bundleno = 316 (0x13c), region = 36  ;;  %s324_s27 = sadd.s32 (!%p259_p10), 1, %s1408_s21 }
  0x18   : > { %s335_s8 = sadd.s32 (!%p259_p10), 2, %s1408_s21  ;;  %p327_p0 = scmp.lt.s32.totalorder (!%p259_p10), %s324_s27, 17 }
  0x19   : > { %p338_p1 = scmp.lt.s32.totalorder (!%p259_p10), %s335_s8, 17  ;;  %s1731_s0 = sld [smem:[#allocation9_spill]] (!%p259_p10) }
  0x1a   : > { %s1632_s14 = sand.u32 (!%p259_p10), 1, %s1400_s19  }
  0x1b   : > { %s1103_s15 = sshll.u32 (!%p259_p10), %s1632_s14, 4  ;;  %s902_s12 = scalar_lea.sflag (!%p259_p10), [#allocation3], %s1632_s14 }
  0x1c   : > { %v1108_v0 = vld [vmem:[%s1723_s3 + $0x2] sm:$0x3]  ;;  %vm378_vm0 = vcmask 1041408   ;;  %v350_v1 = vld [vmem:[%s1723_s3] sm:$0x3]  ;;  %v1426_v2 = vmov 0.0  }
  0x1d   : > { %1158 = vmatprep.subr.bf16.mxu0 %v1426_v2  ;;  %v380_v3 = vsel %vm378_vm0, %v1108_v0, 0  ;;  %1164 = vmatprep.subr.bf16.mxu1 %v1426_v2  ;;  %v426_v4 = vsel %vm378_vm0, %v350_v1, 0  ;;  %vm1427_vm1 = vmmov 0   ;;  %s316_s16 = scalar_select %p315_p12, %s1412_s22, 1  ;;  %v1115_v5 = vld [vmem:[%s1723_s3 + $0x6] sm:$0x3] }
  0x1e   : > { %1159 = vmatpush3.bf16.msra.mxu0 %v380_v3  ;;  %1165 = vmatpush3.bf16.msra.mxu1 %v426_v4  ;;  %s318_s17 = scalar_select %p317_p13, %s1408_s21, 17  ;;  %vm374_vm2 = vcmask 31744   ;;  %v538_v8 = vsel %vm378_vm0, %v1115_v5, 0  ;;  %v1113_v14 = vld [vmem:[%s1723_s3 + $0x4] sm:$0x3]  ;;  %vm471_vm4 = vcmask 1046528  }
  0x1f   : > { %1160 = vmatprep.mubr.msk.bf16.mxu0 %vm1427_vm1, %v1426_v2  ;;  %1166 = vmatprep.mubr.msk.bf16.mxu1 %vm1427_vm1, %v1426_v2  ;;  %s1553_s26 = smul.u32 54, %s316_s16  ;;  %s1747_s27 = smov (!%p327_p0, %s324_s27), 17  ;;  %vm361_vm3 = vsmask.f32 7424  ;;  %v1121_v15 = vld [vmem:[%s1723_s3 + $0xa] sm:$0x3] }
  0x20   : > { %1170 = vmatprep.subr.bf16.mxu0 %v1426_v2  ;;  %1176 = vmatprep.subr.bf16.mxu1 %v1426_v2  ;;  %s1212_s30 = smul.u32 3, %s318_s17  ;;  %s1749_s8 = smov (!%p338_p1, %s335_s8), 17  ;;  %v479_v17 = vsel %vm378_vm0, %v1113_v14, 0  ;;  %v657_v20 = vsel %vm378_vm0, %v1121_v15, 0  ;;  %v1118_v26 = vld [vmem:[%s1723_s3 + $0x8] sm:$0x3] }
  0x21   : > { %s1214_s16 = smul.u32 3, %s1747_s27  ;;  %v1126_v35 = vld [vmem:[%s1723_s3 + $0xe] sm:$0x3]  ;;  %v603_v36 = vsel %vm378_vm0, %v1118_v26, 0  ;;  %v1123_v44 = vld [vmem:[%s1723_s3 + $0xc] sm:$0x3] }
  0x22   : > { %s321_s9 = sadd.s32 %s1553_s26, %s1212_s30  ;;  %s1215_s17 = smul.u32 3, %s1749_s8  ;;  %v781_v41 = vsel %vm378_vm0, %v1126_v35, 0  ;;  %v716_v48 = vsel %vm378_vm0, %v1123_v44, 0  ;;  %v1129_v50 = vld [vmem:[%s1723_s3 + $0x10] sm:$0x3] }
  0x23   : > { %s1105_s10 = sshll.u32 %s321_s9, 2  ;;  %s331_s9 = sadd.s32 %s1214_s16, %s1553_s26  ;;  %v835_v51 = vsel %vm378_vm0, %v1129_v50, 0 }
  0x24   : > { %s323_s29 = scalar_lea.vmem %s1731_s0, %s1105_s10  ;;  %s1106_s10 = sshll.u32 %s331_s9, 2 }
  0x25   : > { %v1296_v6 = vld [vmem:[%s323_s29] sm:$0xff]   ;;  %v1297_v7 = vld [vmem:[%s323_s29 + $0x8] ss:$0 sps:$4 sm:$0x11]   ;;  %s342_s27 = sadd.s32 %s1215_s17, %s1553_s26  ;;  %s333_s8 = scalar_lea.vmem %s1721_s1, %s1106_s10 }
  0x26   : > { %v363_v9 = vshrl.u32 %v1296_v6, 16  ;;  %v365_v10 = vshll.u32 %v1296_v6, 16  ;;  %v370_v11 = vshll.u32 %v1297_v7, 16  ;;  %1167 = vmatmul.mubr.msk.bf16.vlgmr.msra.gmra.mxu1 %vm374_vm2, %v1296_v6  ;;  %s1107_s0 = sshll.u32 %s342_s27, 2  ;;  %v1298_v18 = vld [vmem:[%s333_s8] sm:$0xff]   ;;  %v472_v22 = vrot.slane %v1296_v6, 1 }
  0x27   : > { %1177 = vmatpush3.bf16.msra.mxu1 %v538_v8  ;;  %1178 = vmatprep.mubr.msk.bf16.mxu1 %vm1427_vm1, %v1426_v2  ;;  %s344_s29 = scalar_lea.vmem %s1722_s2, %s1107_s0  ;;  %v1299_v23 = vld [vmem:[%s333_s8 + $0x8] ss:$0 sps:$4 sm:$0x11]   ;;  %v473_v24 = vrot.slane %v1297_v7, 1  ;;  %v590_v25 = vshll.u32 %v1298_v18, 16  ;;  %v650_v27 = vrot.slane %v1298_v18, 1 }
  0x28   : > { %v367_v12 = vrot.slane %v365_v10, 1  ;;  %v372_v13 = vrot.slane %v370_v11, 1  ;;  %1188 = vmatprep.subr.bf16.mxu1 %v1426_v2  ;;  %v1300_v21 = vld [vmem:[%s344_s29] sm:$0xff]   ;;  %v651_v28 = vrot.slane %v1299_v23, 1  ;;  %v588_v32 = vshrl.u32 %v1298_v18, 16  ;;  %s1133_s8 = sshll.u32 %s1408_s21, 1 }
  0x29   : > { %v1301_v29 = vld [vmem:[%s344_s29 + $0x8] ss:$0 sps:$4 sm:$0x11]   ;;  %v768_v30 = vshll.u32 %v1300_v21, 16  ;;  %v474_v31 = vsel %vm471_vm4, %v472_v22, %v473_v24  ;;  %v592_v33 = vrot.slane %v590_v25, 1  ;;  %v595_v34 = vshll.u32 %v1299_v23, 16 }
  0x2a   : > { %v368_v16 = vor.u32 %v367_v12, %v363_v9  ;;  %v652_v37 = vsel %vm471_vm4, %v650_v27, %v651_v28  ;;  %v766_v38 = vshrl.u32 %v1300_v21, 16  ;;  %v773_v40 = vshll.u32 %v1301_v29, 16  ;;  %s1134_s30 = sshll.u32 %s1412_s22, 5  ;;  %s307_s29 = scalar_lea.vmem [#allocation2], %s1103_s15 }
  0x2b   : > { %v770_v39 = vrot.slane %v768_v30, 1  ;;  %v593_v42 = vor.u32 %v592_v33, %v588_v32  ;;  %v597_v43 = vrot.slane %v595_v34, 1  ;;  %v828_v52 = vrot.slane %v1300_v21, 1  ;;  %s919_s16 = sadd.s32 %s1134_s30, %s1133_s8  ;;  %s922_s0 = sshll.u32 %s307_s29, 4  ;;  %s1637_s0 = int_to_ptr.vmem [resolvable:$true] %s922_s0 }
  0x2c   : > { %v373_v19 = vsel %vm361_vm3, %v368_v16, %v372_v13  ;;  %v775_v46 = vrot.slane %v773_v40, 1  ;;  %v829_v53 = vrot.slane %v1301_v29, 1  ;;  %s1135_s26 = sshll.u32 %s919_s16, 7  ;;  %s1302_s13 = scalar_lea.vmem %s1637_s0, 256 }
  0x2d   : > { %1161 = vmatmul.mubr.msk.bf16.vlgmr.msra.gmra.mxu0 %vm374_vm2, %v373_v19  ;;  %v771_v45 = vor.u32 %v770_v39, %v766_v38  ;;  %v598_v47 = vsel %vm361_vm3, %v593_v42, %v597_v43  ;;  %s1642_s10 = scalar_lea.hbm %s1724_s4, %s1135_s26  ;;  %p1303_p2 = scmp.ne.s32.totalorder %s1637_s0, %s1302_s13 }
  0x2e   : > { %1171 = vmatpush3.bf16.msra.mxu0 %v479_v17  ;;  %1172 = vmatprep.mubr.msk.bf16.mxu0 %vm1427_vm1, %v1426_v2  ;;  %v830_v54 = vsel %vm471_vm4, %v828_v52, %v829_v53  ;;  %s1428_s27 = smov [#allocation2]  }
  0x2f   : > { %1182 = vmatprep.subr.bf16.mxu0 %v1426_v2  ;;  %1179 = vmatmul.mubr.msk.bf16.vlgmr.msra.gmra.mxu1 %vm374_vm2, %v1298_v18  ;;  %v776_v49 = vsel %vm361_vm3, %v771_v45, %v775_v46  ;;  %p1304_p4 = pnand %p1303_p2, %p1513_p3  ;;  %s1306_s15 = sshll.u32 %s1428_s27, 4  ;;  %s1307_s15 = int_to_ptr.vmem [resolvable:$false] %s1306_s15 }
  0x30   : > { %1189 = vmatpush3.bf16.msra.mxu1 %v657_v20  ;;  %1190 = vmatprep.mubr.msk.bf16.mxu1 %vm1427_vm1, %v1426_v2  ;;  %s1308_s8 = scalar_lea.vmem %s1307_s15, 512  ;;  %p1309_p6 = scmp.lt.s32.totalorder %s1637_s0, %s1307_s15 }
  0x31   : > { %1200 = vmatprep.subr.bf16.mxu1 %v1426_v2  ;;  %p1305_p5 = pneg %p1304_p4  ;;  %p1310_p7 = scmp.lt.s32.totalorder %s1308_s8, %s1302_s13 }
  0x33   : > { %p1311_p9 = por %p1310_p7, %p1309_p6 }
  0x35   : > { %1173 = vmatmul.mubr.msk.bf16.vlgmr.msra.gmra.mxu0 %vm374_vm2, %v474_v31  ;;  %p1312_p10 = pnand %p1311_p9, %p1305_p5 }
  0x36   : > { %1183 = vmatpush3.bf16.msra.mxu0 %v603_v36  ;;  %1184 = vmatprep.mubr.msk.bf16.mxu0 %vm1427_vm1, %v1426_v2 }
  0x37   : > { %1194 = vmatprep.subr.bf16.mxu0 %v1426_v2  ;;  %1191 = vmatmul.mubr.msk.bf16.vlgmr.msra.gmra.mxu1 %vm374_vm2, %v652_v37 }
  0x38   : > { %1201 = vmatpush3.bf16.msra.mxu1 %v781_v41  ;;  %1202 = vmatprep.mubr.msk.bf16.mxu1 %vm1427_vm1, %v1426_v2 }
  0x3d   : > { %1185 = vmatmul.mubr.msk.bf16.vlgmr.msra.gmra.mxu0 %vm374_vm2, %v598_v47 }
  0x3e   : > { %1195 = vmatpush3.bf16.msra.mxu0 %v716_v48  ;;  %1196 = vmatprep.mubr.msk.bf16.mxu0 %vm1427_vm1, %v1426_v2 }
  0x3f   : > { %1206 = vmatprep.subr.bf16.mxu0 %v1426_v2  ;;  %1203 = vmatmul.mubr.msk.bf16.vlgmr.msra.gmra.mxu1 %vm374_vm2, %v776_v49 }
  0x45   : > { %1197 = vmatmul.mubr.msk.bf16.vlgmr.msra.gmra.mxu0 %vm374_vm2, %v1300_v21 }
  0x46   : > { %1207 = vmatpush3.bf16.msra.mxu0 %v835_v51  ;;  %1208 = vmatprep.mubr.msk.bf16.mxu0 %vm1427_vm1, %v1426_v2 }
  0x4d   : > { %1209 = vmatmul.mubr.msk.bf16.vlgmr.msra.gmra.mxu0 %vm374_vm2, %v830_v54 }
  0xe6   : > { %v462_v55 = vpop.f32.mrf.mxu1 }
  0xe8   : > { %v1168_v56 = vpop.f32.mrf.mxu1 }
  0xea   : > { %v465_v57 = vpop.f32.mrf.mxu1 }
  0xec   : > { %v1169_v58 = vpop.f32.mrf.mxu1 }
  0xed   : > { %v416_v59 = vpop.f32.mrf.mxu0 }
  0xee   : > { %v463_v8 = vadd.f32 %v462_v55, %v416_v59 }
  0xef   : > { %v1162_v60 = vpop.f32.mrf.mxu0  ;;  %v574_v61 = vpop.f32.mrf.mxu1 }
  0xf1   : > { %v419_v62 = vpop.f32.mrf.mxu0  ;;  %v1180_v63 = vpop.f32.mrf.mxu1 }
  0xf2   : > { %v466_v14 = vadd.f32 %v465_v57, %v419_v62 }
  0xf3   : > { %v1163_v0 = vpop.f32.mrf.mxu0  ;;  %v577_v1 = vpop.f32.mrf.mxu1 }
  0xf5   : > { %v515_v3 = vpop.f32.mrf.mxu0  ;;  %v1181_v4 = vpop.f32.mrf.mxu1 }
  0xf6   : > { %v522_v11 = vadd.f32 %v515_v3, %v463_v8 }
  0xf7   : > { %v1174_v2 = vpop.f32.mrf.mxu0  ;;  %v693_v5 = vpop.f32.mrf.mxu1 }
  0xf8   : > { %v581_v17 = vadd.f32 %v574_v61, %v522_v11 }
  0xf9   : > { %v518_v6 = vpop.f32.mrf.mxu0  ;;  %v1192_v7 = vpop.f32.mrf.mxu1 }
  0xfa   : > { %v523_v18 = vadd.f32 %v518_v6, %v466_v14 }
  0xfb   : > { %v1175_v9 = vpop.f32.mrf.mxu0  ;;  %v696_v10 = vpop.f32.mrf.mxu1 }
  0xfc   : > { %v582_v24 = vadd.f32 %v577_v1, %v523_v18 }
  0xfd   : > { %v639_v12 = vpop.f32.mrf.mxu0  ;;  %v1193_v13 = vpop.f32.mrf.mxu1 }
  0xfe   : > { %v646_v21 = vadd.f32 %v639_v12, %v581_v17 }
  0xff   : > { %v1186_v15 = vpop.f32.mrf.mxu0  ;;  %v817_v16 = vpop.f32.mrf.mxu1 }
 0x100   : > { %v700_v27 = vadd.f32 %v693_v5, %v646_v21 }
 0x101   : > { %v642_v19 = vpop.f32.mrf.mxu0  ;;  %v1204_v20 = vpop.f32.mrf.mxu1 }
 0x102   : > { %v647_v28 = vadd.f32 %v642_v19, %v582_v24 }
 0x103   : > { %v1187_v22 = vpop.f32.mrf.mxu0  ;;  %v820_v23 = vpop.f32.mrf.mxu1 }
 0x104   : > { %v701_v32 = vadd.f32 %v696_v10, %v647_v28 }
 0x105   : > { %v752_v25 = vpop.f32.mrf.mxu0  ;;  %v1205_v26 = vpop.f32.mrf.mxu1 }
 0x106   : > { %v759_v30 = vadd.f32 %v752_v25, %v700_v27 }
 0x107   : > { %v1198_v29 = vpop.f32.mrf.mxu0 }
 0x108   : > { %v824_v34 = vadd.f32 %v817_v16, %v759_v30 }
 0x109   : > { %v755_v31 = vpop.f32.mrf.mxu0 }
 0x10a   : > { %v760_v35 = vadd.f32 %v755_v31, %v701_v32 }
 0x10b   : > { %v1199_v33 = vpop.f32.mrf.mxu0 }
 0x10c   : > { %v825_v39 = vadd.f32 %v820_v23, %v760_v35 }
 0x10d   : > { %v871_v36 = vpop.f32.mrf.mxu0 }
 0x10e   : > { %v878_v37 = vadd.f32 %v871_v36, %v824_v34 }
 0x10f   : > { %v1210_v38 = vpop.f32.mrf.mxu0 }
 0x110   : > { %880 = vst [vmem:[%s307_s29] sm:$0xff] %v878_v37  ;;  %v889_v43 = vmul.f32 %v878_v37, %v878_v37 }
 0x111   : > { %v874_v40 = vpop.f32.mrf.mxu0 }
 0x112   : > { %v879_v41 = vadd.f32 %v874_v40, %v825_v39 }
 0x113   : > { %v1211_v42 = vpop.f32.mrf.mxu0 }
 0x114   : > { %881 = vst [vmem:[%s307_s29 + $0x8] sm:$0xff] %v879_v41  ;;  %v882_v44 = vadd.f32 %v879_v41, %v878_v37  ;;  %v890_v45 = vmul.f32 %v879_v41, %v879_v41 }
 0x115   : > { %1315 = shalt.err (!%p1312_p10)
}
 0x116   : > { %s1316_s30 = scalar_lea.hbm %s1642_s10, 256  ;;  %s1320_s26 = scalar_lea.hbm %s1724_s4, 8192 }
 0x117   : > { %p1317_p11 = scmp.ne.s32.totalorder %s1642_s10, %s1316_s30  ;;  %p1321_p0 = scmp.lt.s32.totalorder %s1642_s10, %s1724_s4 }
 0x118   : > { %p1322_p1 = scmp.lt.s32.totalorder %s1320_s26, %s1316_s30 }
 0x119   : > { %p1318_p12 = pnand %p1317_p11, %p1513_p3 }
 0x11a   : > { %p1323_p2 = por %p1322_p1, %p1321_p0 }
 0x11b   : > { %p1319_p13 = pneg %p1318_p12 }
 0x11d   : > { %p1324_p4 = pnand %p1323_p2, %p1319_p13 }
 0x11f   : > { %1327 = shalt.err (!%p1324_p4)
}
 0x120   : > { %s1429_s13 = smov 128   ;;  %s1430_s27 = smov 8   ;;  %v883_v46 = vrot.slane %v882_v44, 4  ;;  %v891_v47 = vadd.f32 %v890_v45, %v889_v43  ;;  %vm898_vm5 = vcmask 1040384  }
 0x121   : > { %1216 = dma.vmem_to_hbm [thread:$0]  (%p1513_p3), %s1637_s0, 256, %s1642_s10, %s902_s12, %s1429_s13, %s1429_s13, %s1430_s27  }
 0x122   : > { %v884_v48 = vadd.f32 %v883_v46, %v882_v44  ;;  %v892_v49 = vrot.slane %v891_v47, 4  ;;  %s1104_s15 = sshll.u32 %s1632_s14, 1  ;;  %s1136_s8 = sshll.u32 %s1412_s22, 4 }
 0x123   : > { %s936_s30 = sadd.s32 %s1408_s21, %s1136_s8  ;;  %s314_s29 = scalar_lea.vmem [#allocation4], %s1104_s15 }
 0x124   : > { %v885_v50 = vrot.slane %v884_v48, 2  ;;  %v893_v51 = vadd.f32 %v892_v49, %v891_v47  ;;  %s1137_s16 = sshll.u32 %s936_s30, 5  ;;  %s940_s26 = sshll.u32 %s314_s29, 4  ;;  %s941_s26 = int_to_ptr.vmem [resolvable:$true] %s940_s26 }
 0x125   : > { %s1673_s12 = scalar_lea.hbm %s1725_s5, %s1137_s16  ;;  %s907_s22 = scalar_lea.sflag [#allocation5], %s1632_s14 }
 0x126   : > { %v886_v52 = vadd.f32 %v885_v50, %v884_v48  ;;  %v894_v53 = vrot.slane %v893_v51, 2  ;;  %s1328_s21 = scalar_lea.vmem %s941_s26, 32  ;;  %s1431_s17 = smov [#allocation4]  }
 0x127   : > { %p1329_p5 = scmp.ne.s32.totalorder %s941_s26, %s1328_s21  ;;  %s1332_s9 = sshll.u32 %s1431_s17, 4  ;;  %s1333_s9 = int_to_ptr.vmem [resolvable:$false] %s1332_s9 }
 0x128   : > { %v887_v54 = vrot.slane %v886_v52, 1  ;;  %v895_v55 = vadd.f32 %v894_v53, %v893_v51  ;;  %s1334_s13 = scalar_lea.vmem %s1333_s9, 64  ;;  %p1335_p9 = scmp.lt.s32.totalorder %s941_s26, %s1333_s9 }
 0x129   : > { %p1330_p6 = pnand %p1329_p5, %p1513_p3  ;;  %p1336_p10 = scmp.lt.s32.totalorder %s1334_s13, %s1328_s21 }
 0x12a   : > { %v896_v56 = vrot.slane %v895_v55, 1  ;;  %v888_v57 = vadd.f32 %v887_v54, %v886_v52 }
 0x12b   : > { %p1331_p7 = pneg %p1330_p6  ;;  %p1337_p11 = por %p1336_p10, %p1335_p9 }
 0x12c   : > { %v897_v58 = vadd.f32 %v896_v56, %v895_v55 }
 0x12d   : > { %p1338_p12 = pnand %p1337_p11, %p1331_p7 }
 0x12e   : > { %v899_v59 = vsel %vm898_vm5, %v888_v57, %v897_v58 }
 0x12f   : > { %900 = vst [vmem:[%s314_s29] sm:$0x3] %v899_v59 }
 0x130   : > { %1341 = shalt.err (!%p1338_p12)
}
 0x131   : > { %s1342_s27 = scalar_lea.hbm %s1673_s12, 32  ;;  %s1346_s8 = scalar_lea.hbm %s1725_s5, 1024 }
 0x132   : > { %p1343_p13 = scmp.ne.s32.totalorder %s1673_s12, %s1342_s27  ;;  %p1347_p2 = scmp.lt.s32.totalorder %s1673_s12, %s1725_s5 }
 0x133   : > { %p1348_p4 = scmp.lt.s32.totalorder %s1346_s8, %s1342_s27 }
 0x134   : > { %p1344_p0 = pnand %p1343_p13, %p1513_p3 }
 0x135   : > { %p1349_p5 = por %p1348_p4, %p1347_p2 }
 0x136   : > { %p1345_p1 = pneg %p1344_p0 }
 0x138   : > { %p1350_p6 = pnand %p1349_p5, %p1345_p1 }
 0x13a   : > { %1353 = shalt.err (!%p1350_p6)
}
 0x13b   : > { %1217 = dma.vmem_to_hbm [thread:$0]  (%p1513_p3), %s941_s26, 32, %s1673_s12, %s907_s22  }
 0x13c PF: > { %p1227_p7 = scmp.ge.s32.totalorder %s1424_s25, 2  ;;  %s952_s29 = sand.u32 1, %s1396_s18  }
 0x13d   : > { %s953_s0 = scalar_lea.sflag [#allocation3], %s952_s29 }
 0x13e   : > { %p1221_p9 = pnand %p1227_p7, %p1522_p8 }
 0x140   : > { %p1222_p10 = pneg %p1221_p9 }
 0x142   : > { %1387 = dma.done.wait (%p1222_p10), %s953_s0, 256  }
 0x143   : > { %1389 = vsyncadd (%p1222_p10), %s953_s0, 4294967040  ;;  %s962_s10 = scalar_lea.sflag [#allocation5], %s952_s29 }
 0x144   : > { %1391 = dma.done.wait (%p1222_p10), %s962_s10, 32  }
 0x145   : > { %1393 = vsyncadd (%p1222_p10), %s962_s10, 4294967264  ;;  %s22_s25 = sadd.s32 1, %s1424_s25   ;;  %s1732_s6 = sld [smem:[#allocation8_spill]] }
 0x146   : > { %p19_p11 = scmp.ge.s32.totalorder %s22_s25, 34   ;;  %s1733_s18 = smov %s1400_s19 }
 0x147   : > { %s1734_s19 = smov %s1404_s20  ;;  %s1735_s20 = smov %s1531_s11 }
 0x148   : > { %s1736_s21 = smov %s1416_s23  ;;  %s1737_s22 = smov %s1420_s24 }
 0x149   : > { %s1738_s23 = smov %s1741_s28  ;;  %21 = sbr.rel (!%p19_p11) target bundleno = 9 (0x9), region = 102 }
 0x14b   : > { %s1739_s24 = smov %s1732_s6 }
 0x14e   :  { %967 = vsyncpa [#allocation3], 1 }
 0x14f   :  { %969 = vsyncpa [#allocation3 + $0x1], 1 }
 0x150   :  { %970 = vsyncpa [#allocation5], 1 }
 0x151   :  { %972 = vsyncpa [#allocation5 + $0x1], 1 }

</bundles_post_ra>
